<compile_context>
chip_gen: v7x
topology: tpu7x:2x2x1
jax: 0.10.0
libtpu: 0.0.40
codegen_flags: <defaults>
</compile_context>

<pallas_src>
import jax
import jax.numpy as jnp
from jax.experimental import pallas as pl
from jax.experimental.pallas import tpu as pltpu


def _spectral_phase_kernel(mag_ref, ph_ref, ws_ref, wp_ref, w1_ref, w2_ref, o_ref):
    """One batch sample per grid step.

    mag_ref, ph_ref : [1, L, 9C]  im2col patches of |rfft2(x)| and angle(rfft2(x))
    ws_ref, wp_ref  : [9C, C]     3x3 conv weights in matmul form (pre-transposed)
    w1_ref          : [C, Cr]     channel-attention fc1 (pre-transposed)
    w2_ref          : [Cr, C]     channel-attention fc2 (pre-transposed)
    o_ref           : [1, L, 2C]  [:, :, :C] = rescaled magnitude, [:, :, C:] = phase
    """
    C = ws_ref.shape[1]

    mag_cols = mag_ref[0]                                   # [L, 9C]
    ph_cols = ph_ref[0]                                     # [L, 9C]

    # spectral_net: Conv3x3 (single MXU matmul) + ReLU
    m = jnp.dot(mag_cols, ws_ref[...], preferred_element_type=jnp.float32)  # [L, C]
    m = jnp.maximum(m, 0.0)

    # phase_net: Conv3x3
    p = jnp.dot(ph_cols, wp_ref[...], preferred_element_type=jnp.float32)   # [L, C]

    # Channel attention: global avg & max pool over the spatial (L) axis,
    # shared 2-layer MLP (batched as a single [2, C] matmul pair), sigmoid.
    avg = jnp.mean(m, axis=0, keepdims=True)                # [1, C]
    mx = jnp.max(m, axis=0, keepdims=True)                  # [1, C]
    pooled = jnp.concatenate([avg, mx], axis=0)             # [2, C]
    h = jnp.dot(pooled, w1_ref[...], preferred_element_type=jnp.float32)    # [2, Cr]
    h = jnp.maximum(h, 0.0)
    z = jnp.dot(h, w2_ref[...], preferred_element_type=jnp.float32)         # [2, C]
    logits = z[0:1, :] + z[1:2, :]                          # [1, C]
    att = 1.0 / (1.0 + jnp.exp(-logits))                    # sigmoid

    m_scaled = m * att                                      # broadcast over L

    o_ref[0] = jnp.concatenate([m_scaled, p], axis=-1).astype(o_ref.dtype)


def spectral_phase_forward(x, w_spec, w_phase, w_fc1, w_fc2):
    """Forward pass matching EnhancedSpectralPhaseEnhancementModule.

    x       : [N, C, H, W] float32 (NCHW, as in PyTorch)
    w_spec  : [C, C, 3, 3]  spectral_net Conv2d weight (bias=False)
    w_phase : [C, C, 3, 3]  phase_net Conv2d weight (bias=False)
    w_fc1   : [Cr, C]       ChannelAttention fc[0] Linear weight (out, in)
    w_fc2   : [C, Cr]       ChannelAttention fc[2] Linear weight (out, in)
    """
    N, C, H, W = x.shape

    # --- FFT front-end (no FFT primitive in Pallas; runs in XLA) ---
    fx = jnp.fft.rfft2(x.astype(jnp.float32), axes=(-2, -1))   # [N, C, Hf, Wf] complex64
    Hf, Wf = fx.shape[-2], fx.shape[-1]
    mag = jnp.abs(fx)
    phase = jnp.angle(fx)

    # NCHW -> NHWC, zero-pad spatially (padding=1), im2col to [N, Hf*Wf, 9*C]
    def im2col(a_nchw):
        a = a_nchw.transpose(0, 2, 3, 1)                        # [N, Hf, Wf, C]
        a = jnp.pad(a, ((0, 0), (1, 1), (1, 1), (0, 0)))
        cols = [a[:, dh:dh + Hf, dw:dw + Wf, :]
                for dh in range(3) for dw in range(3)]
        return jnp.concatenate(cols, axis=-1).reshape(N, Hf * Wf, 9 * C)

    mag_cols = im2col(mag)
    ph_cols = im2col(phase)

    # Conv weights [Cout, Cin, 3, 3] -> matmul form: row (kh*3+kw)*C + cin, col cout.
    ws_mat = jnp.transpose(w_spec, (2, 3, 1, 0)).reshape(9 * C, C)
    wp_mat = jnp.transpose(w_phase, (2, 3, 1, 0)).reshape(9 * C, C)
    # Linear weights pre-transposed so the kernel never transposes.
    w1 = w_fc1.T                                                # [C, Cr]
    w2 = w_fc2.T                                                # [Cr, C]
    Cr = w1.shape[1]
    L = Hf * Wf

    out = pl.pallas_call(
        _spectral_phase_kernel,
        out_shape=jax.ShapeDtypeStruct((N, L, 2 * C), jnp.float32),
        grid=(N,),
        in_specs=[
            pl.BlockSpec((1, L, 9 * C), lambda n: (n, 0, 0)),
            pl.BlockSpec((1, L, 9 * C), lambda n: (n, 0, 0)),
            pl.BlockSpec((9 * C, C), lambda n: (0, 0)),
            pl.BlockSpec((9 * C, C), lambda n: (0, 0)),
            pl.BlockSpec((C, Cr), lambda n: (0, 0)),
            pl.BlockSpec((Cr, C), lambda n: (0, 0)),
        ],
        out_specs=pl.BlockSpec((1, L, 2 * C), lambda n: (n, 0, 0)),
        compiler_params=pltpu.CompilerParams(
            dimension_semantics=("parallel",)),
    )(mag_cols, ph_cols, ws_mat, wp_mat, w1, w2)

    mag_scaled = out[:, :, :C].reshape(N, Hf, Wf, C).transpose(0, 3, 1, 2)
    phase_proc = out[:, :, C:].reshape(N, Hf, Wf, C).transpose(0, 3, 1, 2)

    # fft_processed = magnitude * exp(i * phase);  irfft2 back to pixel space.
    fft_processed = jax.lax.complex(mag_scaled * jnp.cos(phase_proc),
                                    mag_scaled * jnp.sin(phase_proc))
    x_rec = jnp.fft.irfft2(fft_processed, s=(H, W), axes=(-2, -1))
    return x_rec


def _reference(x, w_spec, w_phase, w_fc1, w_fc2):
    """Pure-JAX reference (same math, no Pallas) for correctness check."""
    fx = jnp.fft.rfft2(x, axes=(-2, -1))
    mag = jnp.abs(fx)
    phase = jnp.angle(fx)

    def conv3x3(a, w):
        return jax.lax.conv_general_dilated(
            a, w, window_strides=(1, 1), padding=((1, 1), (1, 1)),
            dimension_numbers=("NCHW", "OIHW", "NCHW"))

    m = jax.nn.relu(conv3x3(mag, w_spec))
    p = conv3x3(phase, w_phase)
    avg = m.mean(axis=(2, 3))
    mx = m.max(axis=(2, 3))

    def fc(v):
        return jax.nn.relu(v @ w_fc1.T) @ w_fc2.T

    att = jax.nn.sigmoid(fc(avg) + fc(mx))[:, :, None, None]
    m = m * att
    fftp = jax.lax.complex(m * jnp.cos(p), m * jnp.sin(p))
    return jnp.fft.irfft2(fftp, s=x.shape[-2:], axes=(-2, -1))


if __name__ == "__main__":
    key = jax.random.PRNGKey(0)
    # channel=32 with reduction_ratio=16 -> hidden=2 (keeps the CA MLP non-degenerate)
    N, C, H, W = 2, 32, 16, 16
    reduction_ratio = 16
    Cr = C // reduction_ratio

    k1, k2, k3, k4, k5 = jax.random.split(key, 5)
    x = jax.random.normal(k1, (N, C, H, W), dtype=jnp.float32)

    s_conv = 1.0 / jnp.sqrt(jnp.float32(C * 9))
    s_fc1 = 1.0 / jnp.sqrt(jnp.float32(C))
    s_fc2 = 1.0 / jnp.sqrt(jnp.float32(Cr))
    w_spec = jax.random.normal(k2, (C, C, 3, 3), dtype=jnp.float32) * s_conv
    w_phase = jax.random.normal(k3, (C, C, 3, 3), dtype=jnp.float32) * s_conv
    w_fc1 = jax.random.normal(k4, (Cr, C), dtype=jnp.float32) * s_fc1
    w_fc2 = jax.random.normal(k5, (C, Cr), dtype=jnp.float32) * s_fc2

    out = spectral_phase_forward(x, w_spec, w_phase, w_fc1, w_fc2)
    out = jax.block_until_ready(out)
    assert out.shape == (N, C, H, W), out.shape
    assert bool(jnp.isfinite(out).all())

    ref = _reference(x, w_spec, w_phase, w_fc1, w_fc2)
    rel_err = float(jnp.max(jnp.abs(out - ref)) / (jnp.max(jnp.abs(ref)) + 1e-6))
    assert rel_err < 1e-2, f"mismatch vs reference: rel_err={rel_err}"

    print("KERNEL_OK")
</pallas_src>

<mosaic_0001>
module attributes {stable_mosaic.version = 11 : i64} {
  func.func @_spectral_phase_kernel(%arg0: i32, %arg1: memref<1x144x288xf32, #tpu.memory_space<vmem>>, %arg2: memref<1x144x288xf32, #tpu.memory_space<vmem>>, %arg3: memref<288x32xf32, #tpu.memory_space<vmem>>, %arg4: memref<288x32xf32, #tpu.memory_space<vmem>>, %arg5: memref<32x2xf32, #tpu.memory_space<vmem>>, %arg6: memref<2x32xf32, #tpu.memory_space<vmem>>, %arg7: memref<1x144x64xf32, #tpu.memory_space<vmem>>) attributes {dimension_semantics = [#tpu.dimension_semantics<parallel>], iteration_bounds = array<i64: 2>, scalar_prefetch = 0 : i64, scratch_operands = 0 : i64, tpu.core_type = #tpu.core_type<tc>, window_params = [{transform_indices = @transform_0, window_bounds = array<i64: 1, 144, 288>}, {transform_indices = @transform_1, window_bounds = array<i64: 1, 144, 288>}, {pipeline_mode = #tpu.pipeline_mode<synchronous>, transform_indices = @transform_2, window_bounds = array<i64: 288, 32>}, {pipeline_mode = #tpu.pipeline_mode<synchronous>, transform_indices = @transform_3, window_bounds = array<i64: 288, 32>}, {pipeline_mode = #tpu.pipeline_mode<synchronous>, transform_indices = @transform_4, window_bounds = array<i64: 32, 2>}, {pipeline_mode = #tpu.pipeline_mode<synchronous>, transform_indices = @transform_5, window_bounds = array<i64: 2, 32>}, {transform_indices = @transform_6, window_bounds = array<i64: 1, 144, 64>}]} {
    %c0 = arith.constant 0 : index
    %c0_0 = arith.constant 0 : index
    %c0_1 = arith.constant 0 : index
    %0 = vector.load %arg1[%c0, %c0_0, %c0_1] : memref<1x144x288xf32, #tpu.memory_space<vmem>>, vector<1x144x288xf32>
    %1 = vector.shape_cast %0 : vector<1x144x288xf32> to vector<144x288xf32>
    %c0_2 = arith.constant 0 : index
    %c0_3 = arith.constant 0 : index
    %c0_4 = arith.constant 0 : index
    %2 = vector.load %arg2[%c0_2, %c0_3, %c0_4] : memref<1x144x288xf32, #tpu.memory_space<vmem>>, vector<1x144x288xf32>
    %3 = vector.shape_cast %2 : vector<1x144x288xf32> to vector<144x288xf32>
    %c0_5 = arith.constant 0 : index
    %c0_6 = arith.constant 0 : index
    %4 = vector.load %arg3[%c0_5, %c0_6] : memref<288x32xf32, #tpu.memory_space<vmem>>, vector<288x32xf32>
    %cst = arith.constant dense<0.000000e+00> : vector<144x32xf32>
    %5 = tpu.matmul %1, %4, %cst {dimension_numbers = #tpu.dot_dimension_numbers<[1], [0], [0], [1], [0, 0, 1, 1], [], []>} : vector<144x288xf32>, vector<288x32xf32>, vector<144x32xf32> -> vector<144x32xf32>
    %cst_7 = arith.constant 0.000000e+00 : f32
    %6 = vector.broadcast %cst_7 : f32 to vector<144x32xf32>
    %7 = arith.maximumf %5, %6 : vector<144x32xf32>
    %c0_8 = arith.constant 0 : index
    %c0_9 = arith.constant 0 : index
    %8 = vector.load %arg4[%c0_8, %c0_9] : memref<288x32xf32, #tpu.memory_space<vmem>>, vector<288x32xf32>
    %cst_10 = arith.constant dense<0.000000e+00> : vector<144x32xf32>
    %9 = tpu.matmul %3, %8, %cst_10 {dimension_numbers = #tpu.dot_dimension_numbers<[1], [0], [0], [1], [0, 0, 1, 1], [], []>} : vector<144x288xf32>, vector<288x32xf32>, vector<144x32xf32> -> vector<144x32xf32>
    %cst_11 = arith.constant dense<0.000000e+00> : vector<32xf32>
    %10 = vector.multi_reduction <add>, %7, %cst_11 [0] : vector<144x32xf32> to vector<32xf32>
    %11 = vector.shape_cast %10 : vector<32xf32> to vector<1x32xf32>
    %cst_12 = arith.constant 1.440000e+02 : f32
    %12 = vector.broadcast %cst_12 : f32 to vector<1x32xf32>
    %13 = arith.divf %11, %12 : vector<1x32xf32>
    %cst_13 = arith.constant dense<0xFF800000> : vector<32xf32>
    %14 = vector.multi_reduction <maximumf>, %7, %cst_13 [0] : vector<144x32xf32> to vector<32xf32>
    %15 = vector.shape_cast %14 : vector<32xf32> to vector<1x32xf32>
    %16 = tpu.concatenate %13, %15 in 0 : vector<1x32xf32>, vector<1x32xf32> -> vector<2x32xf32>
    %c0_14 = arith.constant 0 : index
    %c0_15 = arith.constant 0 : index
    %17 = vector.load %arg5[%c0_14, %c0_15] : memref<32x2xf32, #tpu.memory_space<vmem>>, vector<32x2xf32>
    %cst_16 = arith.constant dense<0.000000e+00> : vector<2x2xf32>
    %18 = tpu.matmul %16, %17, %cst_16 {dimension_numbers = #tpu.dot_dimension_numbers<[1], [0], [0], [1], [0, 0, 1, 1], [], []>} : vector<2x32xf32>, vector<32x2xf32>, vector<2x2xf32> -> vector<2x2xf32>
    %cst_17 = arith.constant 0.000000e+00 : f32
    %19 = vector.broadcast %cst_17 : f32 to vector<2x2xf32>
    %20 = arith.maximumf %18, %19 : vector<2x2xf32>
    %c0_18 = arith.constant 0 : index
    %c0_19 = arith.constant 0 : index
    %21 = vector.load %arg6[%c0_18, %c0_19] : memref<2x32xf32, #tpu.memory_space<vmem>>, vector<2x32xf32>
    %cst_20 = arith.constant dense<0.000000e+00> : vector<2x32xf32>
    %22 = tpu.matmul %20, %21, %cst_20 {dimension_numbers = #tpu.dot_dimension_numbers<[1], [0], [0], [1], [0, 0, 1, 1], [], []>} : vector<2x2xf32>, vector<2x32xf32>, vector<2x32xf32> -> vector<2x32xf32>
    %23 = vector.extract_strided_slice %22 {offsets = [0, 0], sizes = [1, 32], strides = [1, 1]} : vector<2x32xf32> to vector<1x32xf32>
    %24 = vector.extract_strided_slice %22 {offsets = [1, 0], sizes = [1, 32], strides = [1, 1]} : vector<2x32xf32> to vector<1x32xf32>
    %25 = arith.addf %23, %24 : vector<1x32xf32>
    %cst_21 = arith.constant 0.000000e+00 : f32
    %26 = vector.broadcast %cst_21 : f32 to vector<1x32xf32>
    %27 = arith.subf %26, %25 : vector<1x32xf32>
    %28 = math.exp %27 : vector<1x32xf32>
    %cst_22 = arith.constant 1.000000e+00 : f32
    %29 = vector.broadcast %cst_22 : f32 to vector<1x32xf32>
    %30 = arith.addf %29, %28 : vector<1x32xf32>
    %cst_23 = arith.constant 1.000000e+00 : f32
    %31 = vector.broadcast %cst_23 : f32 to vector<1x32xf32>
    %32 = arith.divf %31, %30 : vector<1x32xf32>
    %33 = vector.broadcast %32 : vector<1x32xf32> to vector<144x32xf32>
    %34 = arith.mulf %7, %33 : vector<144x32xf32>
    %35 = tpu.concatenate %34, %9 in 1 : vector<144x32xf32>, vector<144x32xf32> -> vector<144x64xf32>
    %c0_24 = arith.constant 0 : index
    %c0_25 = arith.constant 0 : index
    %c0_26 = arith.constant 0 : index
    %36 = vector.load %arg7[%c0_24, %c0_25, %c0_26] : memref<1x144x64xf32, #tpu.memory_space<vmem>>, vector<1x144x64xf32>
    %37 = vector.shape_cast %36 : vector<1x144x64xf32> to vector<144x64xf32>
    %38 = vector.shape_cast %35 : vector<144x64xf32> to vector<1x144x64xf32>
    tpu.vector_store %arg7[%c0_24, %c0_25, %c0_26], %38 {strides = array<i32>} : memref<1x144x64xf32, #tpu.memory_space<vmem>>, vector<1x144x64xf32>,
    return
  }
  func.func @transform_0(%arg0: i32) -> (i32, i32, i32) {
    %c0_i32 = arith.constant 0 : i32
    %c0_i32_0 = arith.constant 0 : i32
    %c0_i32_1 = arith.constant 0 : i32
    return %arg0, %c0_i32, %c0_i32_0 : i32, i32, i32
  }
  func.func @transform_1(%arg0: i32) -> (i32, i32, i32) {
    %c0_i32 = arith.constant 0 : i32
    %c0_i32_0 = arith.constant 0 : i32
    %c0_i32_1 = arith.constant 0 : i32
    return %arg0, %c0_i32, %c0_i32_0 : i32, i32, i32
  }
  func.func @transform_2(%arg0: i32) -> (i32, i32) {
    %c0_i32 = arith.constant 0 : i32
    %c0_i32_0 = arith.constant 0 : i32
    %c0_i32_1 = arith.constant 0 : i32
    return %c0_i32, %c0_i32_0 : i32, i32
  }
  func.func @transform_3(%arg0: i32) -> (i32, i32) {
    %c0_i32 = arith.constant 0 : i32
    %c0_i32_0 = arith.constant 0 : i32
    %c0_i32_1 = arith.constant 0 : i32
    return %c0_i32, %c0_i32_0 : i32, i32
  }
  func.func @transform_4(%arg0: i32) -> (i32, i32) {
    %c0_i32 = arith.constant 0 : i32
    %c0_i32_0 = arith.constant 0 : i32
    %c0_i32_1 = arith.constant 0 : i32
    return %c0_i32, %c0_i32_0 : i32, i32
  }
  func.func @transform_5(%arg0: i32) -> (i32, i32) {
    %c0_i32 = arith.constant 0 : i32
    %c0_i32_0 = arith.constant 0 : i32
    %c0_i32_1 = arith.constant 0 : i32
    return %c0_i32, %c0_i32_0 : i32, i32
  }
  func.func @transform_6(%arg0: i32) -> (i32, i32, i32) {
    %c0_i32 = arith.constant 0 : i32
    %c0_i32_0 = arith.constant 0 : i32
    %c0_i32_1 = arith.constant 0 : i32
    return %arg0, %c0_i32, %c0_i32_0 : i32, i32, i32
  }
}

</mosaic_0001>

<bundles_post_ra>
// kernel: tpu_custom_call.1
= control target key start
LH: loop header
LB: loop body
LE: loop exit
PB: predicated region body
PF: predicated region fallthrough
CT: control target
= control target key end

     0   :  { %11 = vsyncpa [#allocation3], 0  ;;  %s3073_s0 = inlined_call_operand.hbm [shape: f32[2,144,288], index: 0, kind: input, shape index: {}]   ;;  %s3074_s1 = inlined_call_operand.hbm [shape: f32[2,144,288], index: 1, kind: input, shape index: {}]   ;;  %s3075_s2 = inlined_call_operand.vmem [shape: f32[288,32], index: 2, kind: input, shape index: {}]   ;;  %s3076_s3 = inlined_call_operand.vmem [shape: f32[288,32], index: 3, kind: input, shape index: {}]   ;;  %s3077_s4 = inlined_call_operand.vmem [shape: f32[32,2], index: 4, kind: input, shape index: {}]   ;;  %s3078_s5 = inlined_call_operand.vmem [shape: f32[2,32], index: 5, kind: input, shape index: {}]   ;;  %s3079_s6 = inlined_call_operand.vmem [shape: f32[2,144,64], index: 6, kind: output, shape index: {}]  }
   0x1   :  { %13 = vsyncpa [#allocation3 + $0x1], 0 }
   0x2   :  { %14 = vsyncpa [#allocation5], 0 }
   0x3   :  { %16 = vsyncpa [#allocation5 + $0x1], 0  ;;  %s2223_s21 = smov 0   ;;  %s2225_s22 = smov 0  }
   0x4   :  { %s2227_s23 = smov 0   ;;  %s2229_s24 = smov 0  }
   0x5 LB: > { %s2242_s25 = sadd.s32 4294967295, %s2178_s24   ;;  %s2245_s26 = sadd.s32 1, %s2178_s24   ;;  %s2178_s24 = sphi %s2229_s24, %s3089_s24   ;;  %s2174_s23 = sphi %s2227_s23, %s3088_s23   ;;  %s2170_s22 = sphi %s2225_s22, %s3087_s22   ;;  %s2166_s21 = sphi %s2223_s21, %s3086_s21  }
   0x6   : > { %s26_s27 = ssub.s32 %s2178_s24, %s2245_s26  ;;  %s29_s28 = sadd.s32 1, %s2174_s23 }
   0x7   : > { %p27_p0 = scmp.eq.s32.totalorder %s26_s27, 0  ;;  %p36_p1 = scmp.ne.s32.totalorder %s2174_s23, %s2170_s22 }
   0x8   : > { %p37_p2 = scmp.eq.s32.totalorder %s2178_s24, 0  ;;  %p42_p3 = scmp.ne.s32.totalorder %s2170_s22, %s2166_s21 }
   0x9   : > { %s2255_s29 = scalar_select %p27_p0, %s2174_s23, %s29_s28  }
   0xa   : > { %p38_p4 = por %p37_p2, %p36_p1  ;;  %p43_p5 = scmp.eq.s32.totalorder %s2242_s25, 0 }
   0xb   : > { %p2037_p6 = scmp.lt.s32.totalorder %s2178_s24, 2  ;;  %s2264_s7 = sand.u32 1, %s2174_s23  }
   0xc   : > { %p2259_p7 = por %p43_p5, %p42_p3  ;;  %s2020_s8 = smul.u32 432, %s2264_s7 }
   0xd   : > { %s2021_s9 = smul.u32 6912, %s2178_s24  ;;  %p2268_p8 = pnand %p2037_p6, %p38_p4 }
   0xe   : > { %s3081_s30 = scalar_select %p2259_p7, 1, 0 }
   0xf   : > { %s2277_s13 = scalar_lea.hbm %s3073_s0, %s2021_s9  ;;  %s218_s14 = scalar_lea.vmem [#allocation2], %s2020_s8 }
  0x10   : > { %s225_s15 = sshll.u32 %s218_s14, 4  ;;  %s215_s16 = scalar_lea.sflag [#allocation3], %s2264_s7  ;;  %s2281_s15 = int_to_ptr.vmem [resolvable:$true] %s225_s15 }
  0x11   : > { %s2080_s17 = scalar_lea.hbm %s2277_s13, 6912  ;;  %p2082_p11 = pneg %p2268_p8 }
  0x12   : > { %p2081_p10 = scmp.ne.s32.totalorder %s2277_s13, %s2080_s17  ;;  %s2085_s20 = scalar_lea.hbm %s3073_s0, 13824 }
  0x13   : > { %p2086_p0 = scmp.lt.u32.totalorder %s2277_s13, %s3073_s0  ;;  %p2087_p1 = scmp.lt.u32.totalorder %s2085_s20, %s2080_s17 }
  0x14   : > { %p2083_p12 = pnand %p2082_p11, %p2081_p10  ;;  %p2089_p3 = scmp.lt.u32.totalorder %s2080_s17, %s2277_s13 }
  0x15   : > { %p2088_p2 = por %p2087_p1, %p2086_p0 }
  0x16   : > { %p2084_p13 = pneg %p2083_p12 }
  0x17   : > { %p2090_p4 = por %p2089_p3, %p2088_p2 }
  0x19   : > { %p2091_p5 = pnand %p2090_p4, %p2084_p13 }
  0x1b   : > { %2094 = shalt.err (!%p2091_p5)
}
  0x1c   : > { %s2095_s28 = scalar_lea.vmem %s2281_s15, 6912  ;;  %s2180_s11 = smov [#allocation2]  }
  0x1d   : > { %p2096_p6 = scmp.ne.s32.totalorder %s2281_s15, %s2095_s28  ;;  %s2100_s12 = sshll.u32 %s2180_s11, 4  ;;  %s2101_s12 = int_to_ptr.vmem [resolvable:$false] %s2100_s12 }
  0x1e   : > { %s2102_s14 = scalar_lea.vmem %s2101_s12, 13824  ;;  %p2103_p9 = scmp.lt.s32.totalorder %s2281_s15, %s2101_s12 }
  0x1f   : > { %p2098_p10 = pnand %p2096_p6, %p2082_p11  ;;  %p2104_p0 = scmp.lt.s32.totalorder %s2102_s14, %s2095_s28 }
  0x21   : > { %p2099_p12 = pneg %p2098_p10  ;;  %p2105_p1 = por %p2104_p0, %p2103_p9 }
  0x23   : > { %p2106_p2 = pnand %p2105_p1, %p2099_p12 }
  0x25   : > { %2109 = shalt.err (!%p2106_p2)
}
  0x26   : > { %s2181_s17 = smov 384   ;;  %s2182_s18 = smov 24  }
  0x27   : > { %2033 = dma.hbm_to_vmem [thread:$0]  (!%p2268_p8), %s2277_s13, 6912, %s2281_s15, %s215_s16, %s2181_s17, %s2181_s17, %s2182_s18  }
  0x28   : > { %p254_p9 = scmp.lt.s32.totalorder %s2178_s24, 3  ;;  %s2321_s21 = scalar_lea.hbm %s3074_s1, %s2021_s9 }
  0x29   : > { %p3083_p13 = scmp.ge.s32.totalorder %s2178_s24, 1  ;;  %s239_s28 = scalar_lea.vmem [#allocation4], %s2020_s8 }
  0x2a   : > { %s246_s11 = sshll.u32 %s239_s28, 4  ;;  %s236_s13 = scalar_lea.sflag [#allocation5], %s2264_s7  ;;  %s2331_s11 = int_to_ptr.vmem [resolvable:$true] %s246_s11 }
  0x2b   : > { %p2325_p3 = pnand %p3083_p13, %p254_p9  ;;  %s2110_s15 = scalar_lea.hbm %s2321_s21, 6912 }
  0x2c   : > { %p2111_p4 = scmp.ne.s32.totalorder %s2321_s21, %s2110_s15  ;;  %s2115_s16 = scalar_lea.hbm %s3074_s1, 13824 }
  0x2d   : > { %p2116_p10 = scmp.lt.u32.totalorder %s2321_s21, %s3074_s1  ;;  %p2117_p12 = scmp.lt.u32.totalorder %s2115_s16, %s2110_s15 }
  0x2e   : > { %p2113_p5 = pnand %p2111_p4, %p2082_p11  ;;  %p2119_p1 = scmp.lt.u32.totalorder %s2110_s15, %s2321_s21 }
  0x2f   : > { %p2118_p0 = por %p2117_p12, %p2116_p10 }
  0x30   : > { %p2114_p6 = pneg %p2113_p5 }
  0x31   : > { %p2120_p2 = por %p2119_p1, %p2118_p0 }
  0x33   : > { %p2121_p9 = pnand %p2120_p2, %p2114_p6 }
  0x35   : > { %2124 = shalt.err (!%p2121_p9)
}
  0x36   : > { %s2125_s8 = scalar_lea.vmem %s2331_s11, 6912  ;;  %s2183_s19 = smov [#allocation4]  }
  0x37   : > { %p2126_p13 = scmp.ne.s32.totalorder %s2331_s11, %s2125_s8  ;;  %s2130_s20 = sshll.u32 %s2183_s19, 4  ;;  %s2131_s20 = int_to_ptr.vmem [resolvable:$false] %s2130_s20 }
  0x38   : > { %s2132_s28 = scalar_lea.vmem %s2131_s20, 13824  ;;  %p2133_p7 = scmp.lt.s32.totalorder %s2331_s11, %s2131_s20 }
  0x39   : > { %p2128_p4 = pnand %p2126_p13, %p2082_p11  ;;  %p2134_p10 = scmp.lt.s32.totalorder %s2132_s28, %s2125_s8 }
  0x3b   : > { %p2129_p5 = pneg %p2128_p4  ;;  %p2135_p12 = por %p2134_p10, %p2133_p7 }
  0x3d   : > { %p2136_p0 = pnand %p2135_p12, %p2129_p5 }
  0x3f   : > { %2139 = shalt.err (!%p2136_p0)
}
  0x40   : > { %2036 = dma.hbm_to_vmem [thread:$0]  (!%p2268_p8), %s2321_s21, 6912, %s2331_s11, %s236_s13, %s2181_s17, %s2181_s17, %s2182_s18  }
  0x41   : > { %258 = sbr.rel (%p2325_p3) target bundleno = 920 (0x398), region = 44  ;;  %s260_s15 = sand.u32 (!%p2325_p3), 1, %s2170_s22  }
  0x42   : > { %s2024_s24 = smul.u32 (!%p2325_p3), 432, %s260_s15  ;;  %s261_s9 = scalar_lea.sflag (!%p2325_p3), [#allocation3], %s260_s15 }
  0x43   : > { %p3085_p7 = scmp.ne.s32.totalorder (!%p2325_p3), %s3081_s30, 0 }
  0x44   : > { %s2365_s16 = scalar_lea.vmem (!%p2325_p3), [#allocation2], %s2024_s24 }
  0x48   : > { %2157 = dma.done.wait (%p3085_p7), %s261_s9, 6912  }
  0x49   : > { %2159 = vsyncadd (%p3085_p7), %s261_s9, 4294960384  ;;  %s270_s7 = scalar_lea.sflag [#allocation5], %s260_s15  ;;  %s2371_s10 = scalar_lea.vmem [#allocation4], %s2024_s24 }
  0x4a   : > { %2161 = dma.done.wait (%p3085_p7), %s270_s7, 6912  }
  0x4b   : > { %2163 = vsyncadd (%p3085_p7), %s270_s7, 4294960384  ;;  %v2184_v0 = vmov 0.0|0.0   ;;  %v420_v1 = vld [vmem:[%s3075_s2] sm:$0xff]  ;;  %v421_v2 = vld [vmem:[%s3075_s2 + $0x8] sm:$0xff]  ;;  %vm456_vm0 = vcmask 261120   ;;  %vm2185_vm1 = vmmov 0  }
  0x4c   : > { %1898 = vmatprep.subr.bf16.mxu0 %v2184_v0  ;;  %v422_v3 = vld [vmem:[%s3075_s2 + $0x10] sm:$0xff]  ;;  %v1899_v4 = vpack.c.bf16 %v421_v2, %v420_v1  ;;  %v423_v5 = vld [vmem:[%s3075_s2 + $0x18] sm:$0xff]  ;;  %v424_v7 = vld [vmem:[%s3075_s2 + $0x20] sm:$0xff]  ;;  %vm1323_vm2 = vcmask 1040384   ;;  %vm1408_vm3 = vcmask 1041408   ;;  %s2187_s7 = smov 32  }
  0x4d   : > { %v1902_v6 = vpack.c.bf16 %v423_v5, %v422_v3  ;;  %v425_v8 = vld [vmem:[%s3075_s2 + $0x28] sm:$0xff]  ;;  %v426_v10 = vld [vmem:[%s3075_s2 + $0x30] sm:$0xff]  ;;  %v427_v11 = vld [vmem:[%s3075_s2 + $0x38] sm:$0xff]  ;;  %vm1404_vm4 = vcmask 15360   ;;  %p307_p8 = scmp.lt.s32.totalorder %s2242_s25, 1  ;;  %vm1604_vm5 = vcmask 523264  }
  0x4e   : > { %1900 = vmatpush1.bf16.msra.mxu0 %v1899_v4  ;;  %v1905_v9 = vpack.c.bf16 %v425_v8, %v424_v7  ;;  %v452_v12 = vld [vmem:[%s3075_s2 + $0x100] sm:$0xff]  ;;  %v453_v13 = vld [vmem:[%s3075_s2 + $0x108] sm:$0xff]  ;;  %v454_v15 = vld [vmem:[%s3075_s2 + $0x110] sm:$0xff]  ;;  %v1908_v16 = vpack.c.bf16 %v427_v11, %v426_v10 }
  0x4f   : > { %1901 = vmatprep.subr.bf16.mxu0 %v2184_v0  ;;  %v1946_v14 = vpack.c.bf16 %v453_v13, %v452_v12  ;;  %v428_v17 = vld [vmem:[%s3075_s2 + $0x40] sm:$0xff]  ;;  %v455_v18 = vld [vmem:[%s3075_s2 + $0x118] sm:$0xff]  ;;  %v429_v19 = vld [vmem:[%s3075_s2 + $0x48] sm:$0xff]  ;;  %s3091_s25 = smov (!%p307_p8, %s2242_s25), 1 }
  0x50   : > { %v1950_v20 = vpack.c.bf16 %v455_v18, %v454_v15  ;;  %v314_v21 = vld [vmem:[%s2365_s16 + $0x10] sm:$0xff]  ;;  %v313_v22 = vld [vmem:[%s2365_s16 + $0x8] sm:$0xff]  ;;  %v1911_v23 = vpack.c.bf16 %v429_v19, %v428_v17  ;;  %v320_v27 = vld [vmem:[%s2365_s16 + $0x40] sm:$0xff]  ;;  %s2025_s17 = smul.u32 144, %s3091_s25 }
  0x51   : > { %1947 = vmatprep.subr.bf16.mxu1 %v1946_v14  ;;  %1820 = vmatprep.mubr.msk.f32.mxu1 %vm456_vm0, %v314_v21  ;;  %v430_v24 = vld [vmem:[%s3075_s2 + $0x50] sm:$0xff]  ;;  %v431_v25 = vld [vmem:[%s3075_s2 + $0x58] sm:$0xff]  ;;  %v432_v29 = vld [vmem:[%s3075_s2 + $0x60] sm:$0xff] }
  0x52   : > { %1903 = vmatpush1.bf16.msra.mxu0 %v1902_v6  ;;  %1949 = vmatpush3.bf16.msra.mxu1 %v1946_v14  ;;  %v317_v26 = vld [vmem:[%s2365_s16 + $0x28] sm:$0xff]  ;;  %v1914_v28 = vpack.c.bf16 %v431_v25, %v430_v24  ;;  %v323_v31 = vld [vmem:[%s2365_s16 + $0x58] sm:$0xff]  ;;  %v326_v32 = vld [vmem:[%s2365_s16 + $0x70] sm:$0xff]  ;;  %s2992_s21 = scalar_lea.vmem %s3079_s6, %s2025_s17 }
  0x53   : > { %1904 = vmatprep.subr.bf16.mxu0 %v2184_v0  ;;  %1951 = vmatprep.subr.bf16.mxu1 %v1950_v20  ;;  %v433_v30 = vld [vmem:[%s3075_s2 + $0x68] sm:$0xff]  ;;  %v434_v34 = vld [vmem:[%s3075_s2 + $0x70] sm:$0xff]  ;;  %v435_v35 = vld [vmem:[%s3075_s2 + $0x78] sm:$0xff] }
  0x54   : > { %575 = vmatprep.mubr.f32.mxu0 %v313_v22  ;;  %v1917_v33 = vpack.c.bf16 %v433_v30, %v432_v29  ;;  %v329_v36 = vld [vmem:[%s2365_s16 + $0x88] sm:$0xff]  ;;  %v332_v37 = vld [vmem:[%s2365_s16 + $0xa0] sm:$0xff]  ;;  %v1920_v38 = vpack.c.bf16 %v435_v35, %v434_v34  ;;  %v335_v41 = vld [vmem:[%s2365_s16 + $0xb8] sm:$0xff] }
  0x55   : > { %v436_v39 = vld [vmem:[%s3075_s2 + $0x80] sm:$0xff]  ;;  %v437_v40 = vld [vmem:[%s3075_s2 + $0x88] sm:$0xff]  ;;  %v841_v45 = vld [vmem:[%s3076_s3 + $0x10] sm:$0xff] }
  0x56   : > { %1906 = vmatpush1.bf16.msra.mxu0 %v1905_v9  ;;  %1953 = vmatpush3.bf16.msra.mxu1 %v1950_v20  ;;  %v338_v42 = vld [vmem:[%s2365_s16 + $0xd0] sm:$0xff]  ;;  %v840_v44 = vld [vmem:[%s3076_s3 + $0x8] sm:$0xff]  ;;  %v1923_v46 = vpack.c.bf16 %v437_v40, %v436_v39  ;;  %v842_v48 = vld [vmem:[%s3076_s3 + $0x18] sm:$0xff] }
  0x57   : > { %1907 = vmatprep.subr.bf16.mxu0 %v2184_v0  ;;  %1954 = vmatprep.subr.bf16.mxu1 %v2184_v0  ;;  %v839_v43 = vld [vmem:[%s3076_s3] sm:$0xff]  ;;  %v438_v49 = vld [vmem:[%s3075_s2 + $0x90] sm:$0xff]  ;;  %v439_v50 = vld [vmem:[%s3075_s2 + $0x98] sm:$0xff]  ;;  %v1958_v52 = vpack.c.bf16 %v842_v48, %v841_v45 }
  0x58   : > { %v1955_v47 = vpack.c.bf16 %v840_v44, %v839_v43  ;;  %v341_v51 = vld [vmem:[%s2365_s16 + $0xe8] sm:$0xff]  ;;  %v344_v53 = vld [vmem:[%s2365_s16 + $0x100] sm:$0xff]  ;;  %v1926_v56 = vpack.c.bf16 %v439_v50, %v438_v49  ;;  %v347_v59 = vld [vmem:[%s2365_s16 + $0x118] sm:$0xff] }
  0x59   : > { %1821 = vmatmul.mubr.msk.f32.vlgmr.msra.gmra.mrb[0].mxu1 %vm456_vm0, %v317_v26  ;;  %v843_v54 = vld [vmem:[%s3076_s3 + $0x20] sm:$0xff]  ;;  %v844_v55 = vld [vmem:[%s3076_s3 + $0x28] sm:$0xff]  ;;  %v845_v62 = vld [vmem:[%s3076_s3 + $0x30] sm:$0xff] }
  0x5a   : > { %1909 = vmatpush1.bf16.msra.mxu0 %v1908_v16  ;;  %1823 = vmatprep.mubr.msk.f32.mxu1 %vm456_vm0, %v320_v27  ;;  %v440_v57 = vld [vmem:[%s3075_s2 + $0xa0] sm:$0xff]  ;;  %v441_v58 = vld [vmem:[%s3075_s2 + $0xa8] sm:$0xff]  ;;  %v1961_v60 = vpack.c.bf16 %v844_v55, %v843_v54  ;;  %v846_v63 = vld [vmem:[%s3076_s3 + $0x38] sm:$0xff] }
  0x5b   : > { %1910 = vmatprep.subr.bf16.mxu0 %v2184_v0  ;;  %1956 = vmatpush1.bf16.msra.mxu1 %v1955_v47  ;;  %v350_v61 = vld [vmem:[%s2365_s16 + $0x130] sm:$0xff]  ;;  %v1929_v1 = vpack.c.bf16 %v441_v58, %v440_v57  ;;  %v443_v3 = vld [vmem:[%s3075_s2 + $0xb8] sm:$0xff]  ;;  %v1964_v5 = vpack.c.bf16 %v846_v63, %v845_v62  ;;  %v356_v6 = vld [vmem:[%s2365_s16 + $0x160] sm:$0xff] }
  0x5c   : > { %1957 = vmatprep.subr.bf16.mxu1 %v2184_v0  ;;  %v442_v2 = vld [vmem:[%s3075_s2 + $0xb0] sm:$0xff]  ;;  %v353_v4 = vld [vmem:[%s2365_s16 + $0x148] sm:$0xff]  ;;  %v847_v7 = vld [vmem:[%s3076_s3 + $0x40] sm:$0xff] }
  0x5d   : > { %1824 = vmatmul.mubr.msk.f32.gmra.mrb[2].mxu1 %vm456_vm0, %v323_v31  ;;  %v848_v8 = vld [vmem:[%s3076_s3 + $0x48] sm:$0xff]  ;;  %v1932_v9 = vpack.c.bf16 %v443_v3, %v442_v2  ;;  %v444_v10 = vld [vmem:[%s3075_s2 + $0xc0] sm:$0xff]  ;;  %v849_v15 = vld [vmem:[%s3076_s3 + $0x50] sm:$0xff] }
  0x5e   : > { %1912 = vmatpush1.bf16.msra.mxu0 %v1911_v23  ;;  %1826 = vmatprep.mubr.msk.f32.mxu1 %vm456_vm0, %v326_v32  ;;  %v445_v11 = vld [vmem:[%s3075_s2 + $0xc8] sm:$0xff]  ;;  %v1967_v13 = vpack.c.bf16 %v848_v8, %v847_v7  ;;  %v362_v14 = vld [vmem:[%s2365_s16 + $0x190] sm:$0xff]  ;;  %v850_v16 = vld [vmem:[%s3076_s3 + $0x58] sm:$0xff] }
  0x5f   : > { %1913 = vmatprep.subr.bf16.mxu0 %v2184_v0  ;;  %1959 = vmatpush1.bf16.msra.mxu1 %v1958_v52  ;;  %v359_v12 = vld [vmem:[%s2365_s16 + $0x178] sm:$0xff]  ;;  %v1935_v17 = vpack.c.bf16 %v445_v11, %v444_v10  ;;  %v446_v18 = vld [vmem:[%s3075_s2 + $0xd0] sm:$0xff]  ;;  %v365_v20 = vld [vmem:[%s2365_s16 + $0x1a8] sm:$0xff]  ;;  %v1970_v21 = vpack.c.bf16 %v850_v16, %v849_v15 }
  0x60   : > { %1960 = vmatprep.subr.bf16.mxu1 %v2184_v0  ;;  %v447_v19 = vld [vmem:[%s3075_s2 + $0xd8] sm:$0xff]  ;;  %v851_v22 = vld [vmem:[%s3076_s3 + $0x60] sm:$0xff]  ;;  %v852_v23 = vld [vmem:[%s3076_s3 + $0x68] sm:$0xff] }
  0x61   : > { %1827 = vmatmul.mubr.msk.f32.gmra.mrb[4].mxu1 %vm456_vm0, %v329_v36  ;;  %v367_v24 = vld [vmem:[%s2371_s10 + $0x8] sm:$0xff]  ;;  %v1938_v25 = vpack.c.bf16 %v447_v19, %v446_v18  ;;  %v448_v26 = vld [vmem:[%s3075_s2 + $0xe0] sm:$0xff]  ;;  %v853_v29 = vld [vmem:[%s3076_s3 + $0x70] sm:$0xff] }
  0x62   : > { %1915 = vmatpush1.bf16.msra.mxu0 %v1914_v28  ;;  %1829 = vmatprep.mubr.msk.f32.mxu1 %vm456_vm0, %v332_v37  ;;  %v449_v27 = vld [vmem:[%s3075_s2 + $0xe8] sm:$0xff]  ;;  %v1973_v28 = vpack.c.bf16 %v852_v23, %v851_v22  ;;  %v854_v30 = vld [vmem:[%s3076_s3 + $0x78] sm:$0xff]  ;;  %v450_v32 = vld [vmem:[%s3075_s2 + $0xf0] sm:$0xff] }
  0x63   : > { %1916 = vmatprep.subr.bf16.mxu0 %v2184_v0  ;;  %1962 = vmatpush1.bf16.msra.mxu1 %v1961_v60  ;;  %v1941_v31 = vpack.c.bf16 %v449_v27, %v448_v26  ;;  %v1976_v34 = vpack.c.bf16 %v854_v30, %v853_v29  ;;  %v855_v35 = vld [vmem:[%s3076_s3 + $0x80] sm:$0xff]  ;;  %v856_v36 = vld [vmem:[%s3076_s3 + $0x88] sm:$0xff]  ;;  %v857_v39 = vld [vmem:[%s3076_s3 + $0x90] sm:$0xff] }
  0x64   : > { %1963 = vmatprep.subr.bf16.mxu1 %v2184_v0  ;;  %v858_v40 = vld [vmem:[%s3076_s3 + $0x98] sm:$0xff]  ;;  %v859_v44 = vld [vmem:[%s3076_s3 + $0xa0] sm:$0xff]  ;;  %v860_v45 = vld [vmem:[%s3076_s3 + $0xa8] sm:$0xff] }
  0x65   : > { %1830 = vmatmul.mubr.msk.f32.gmra.mrb[6].mxu1 %vm456_vm0, %v335_v41  ;;  %v312_v41 = vld [vmem:[%s2365_s16] sm:$0xff]  ;;  %v1982_v43 = vpack.c.bf16 %v858_v40, %v857_v39  ;;  %v319_v47 = vld [vmem:[%s2365_s16 + $0x38] sm:$0xff]  ;;  %v1985_v48 = vpack.c.bf16 %v860_v45, %v859_v44  ;;  %v322_v52 = vld [vmem:[%s2365_s16 + $0x50] sm:$0xff] }
  0x66   : > { %1918 = vmatpush1.bf16.msra.mxu0 %v1917_v33  ;;  %1832 = vmatprep.mubr.msk.f32.mxu1 %vm456_vm0, %v338_v42  ;;  %v451_v33 = vld [vmem:[%s3075_s2 + $0xf8] sm:$0xff]  ;;  %v316_v42 = vld [vmem:[%s2365_s16 + $0x20] sm:$0xff]  ;;  %v864_v55 = vld [vmem:[%s3076_s3 + $0xc8] sm:$0xff] }
  0x67   : > { %1919 = vmatprep.subr.bf16.mxu0 %v2184_v0  ;;  %1965 = vmatpush1.bf16.msra.mxu1 %v1964_v5  ;;  %v1944_v37 = vpack.c.bf16 %v451_v33, %v450_v32  ;;  %v861_v49 = vld [vmem:[%s3076_s3 + $0xb0] sm:$0xff]  ;;  %v862_v50 = vld [vmem:[%s3076_s3 + $0xb8] sm:$0xff]  ;;  %v863_v54 = vld [vmem:[%s3076_s3 + $0xc0] sm:$0xff] }
  0x68   : > { %1966 = vmatprep.subr.bf16.mxu1 %v2184_v0  ;;  %v325_v57 = vld [vmem:[%s2365_s16 + $0x68] sm:$0xff]  ;;  %v1991_v58 = vpack.c.bf16 %v864_v55, %v863_v54  ;;  %v328_v62 = vld [vmem:[%s2365_s16 + $0x80] sm:$0xff]  ;;  %v327_v3 = vld [vmem:[%s2365_s16 + $0x78] sm:$0xff] }
  0x69   : > { %1833 = vmatmul.mubr.msk.f32.gmra.mrb[8].mxu1 %vm456_vm0, %v341_v51  ;;  %v318_v51 = vld [vmem:[%s2365_s16 + $0x30] sm:$0xff]  ;;  %v866_v60 = vld [vmem:[%s3076_s3 + $0xd8] sm:$0xff]  ;;  %v868_v2 = vld [vmem:[%s3076_s3 + $0xe8] sm:$0xff] }
  0x6a   : > { %1921 = vmatpush1.bf16.msra.mxu0 %v1920_v38  ;;  %1835 = vmatprep.mubr.msk.f32.mxu1 %vm456_vm0, %v344_v53  ;;  %v1979_v38 = vpack.c.bf16 %v856_v36, %v855_v35  ;;  %v1988_v53 = vpack.c.bf16 %v862_v50, %v861_v49  ;;  %v870_v7 = vld [vmem:[%s3076_s3 + $0xf8] sm:$0xff]  ;;  %v330_v8 = vld [vmem:[%s2365_s16 + $0x90] sm:$0xff]  ;;  %v336_v15 = vld [vmem:[%s2365_s16 + $0xc0] sm:$0xff] }
  0x6b   : > { %1922 = vmatprep.subr.bf16.mxu0 %v2184_v0  ;;  %1968 = vmatpush1.bf16.msra.mxu1 %v1967_v13  ;;  %v333_v11 = vld [vmem:[%s2365_s16 + $0xa8] sm:$0xff]  ;;  %v366_v13 = vld [vmem:[%s2371_s10] sm:$0xff]  ;;  %v373_v18 = vld [vmem:[%s2371_s10 + $0x38] sm:$0xff] }
  0x6c   : > { %1969 = vmatprep.subr.bf16.mxu1 %v2184_v0  ;;  %v340_v16 = vld [vmem:[%s2365_s16 + $0xe0] sm:$0xff]  ;;  %v339_v19 = vld [vmem:[%s2365_s16 + $0xd8] sm:$0xff]  ;;  %v376_v22 = vld [vmem:[%s2371_s10 + $0x50] sm:$0xff] }
  0x6d   : > { %1836 = vmatmul.mubr.msk.f32.gmra.mrb[10].mxu1 %vm456_vm0, %v347_v59  ;;  %v865_v59 = vld [vmem:[%s3076_s3 + $0xd0] sm:$0xff]  ;;  %v379_v26 = vld [vmem:[%s2371_s10 + $0x68] sm:$0xff]  ;;  %v381_v33 = vld [vmem:[%s2371_s10 + $0x78] sm:$0xff] }
  0x6e   : > { %1924 = vmatpush1.bf16.msra.mxu0 %v1923_v46  ;;  %1838 = vmatprep.mubr.msk.f32.mxu1 %vm456_vm0, %v350_v61  ;;  %v315_v46 = vld [vmem:[%s2365_s16 + $0x18] sm:$0xff]  ;;  %v324_v61 = vld [vmem:[%s2365_s16 + $0x60] sm:$0xff]  ;;  %v1994_v63 = vpack.c.bf16 %v866_v60, %v865_v59  ;;  %v342_v23 = vld [vmem:[%s2365_s16 + $0xf0] sm:$0xff] }
  0x6f   : > { %1925 = vmatprep.subr.bf16.mxu0 %v2184_v0  ;;  %1971 = vmatpush1.bf16.msra.mxu1 %v1970_v21  ;;  %v372_v21 = vld [vmem:[%s2371_s10 + $0x30] sm:$0xff]  ;;  %v345_v27 = vld [vmem:[%s2365_s16 + $0x108] sm:$0xff]  ;;  %v378_v29 = vld [vmem:[%s2371_s10 + $0x60] sm:$0xff] }
  0x70   : > { %1972 = vmatprep.subr.bf16.mxu1 %v2184_v0  ;;  %v382_v30 = vld [vmem:[%s2371_s10 + $0x80] sm:$0xff]  ;;  %v351_v35 = vld [vmem:[%s2365_s16 + $0x138] sm:$0xff]  ;;  %v354_v39 = vld [vmem:[%s2365_s16 + $0x150] sm:$0xff] }
  0x71   : > { %1839 = vmatmul.mubr.msk.f32.gmra.mrb[12].mxu1 %vm456_vm0, %v353_v4  ;;  %v331_v4 = vld [vmem:[%s2365_s16 + $0x98] sm:$0xff]  ;;  %v352_v32 = vld [vmem:[%s2365_s16 + $0x140] sm:$0xff]  ;;  %v358_v40 = vld [vmem:[%s2365_s16 + $0x170] sm:$0xff] }
  0x72   : > { %1927 = vmatpush1.bf16.msra.mxu0 %v1926_v56  ;;  %1841 = vmatprep.mubr.msk.f32.mxu1 %vm456_vm0, %v356_v6  ;;  %v321_v56 = vld [vmem:[%s2365_s16 + $0x48] sm:$0xff]  ;;  %v869_v6 = vld [vmem:[%s3076_s3 + $0xf0] sm:$0xff]  ;;  %v355_v36 = vld [vmem:[%s2365_s16 + $0x158] sm:$0xff] }
  0x73   : > { %1928 = vmatprep.subr.bf16.mxu0 %v2184_v0  ;;  %1974 = vmatpush1.bf16.msra.mxu1 %v1973_v28  ;;  %v2000_v10 = vpack.c.bf16 %v870_v7, %v869_v6  ;;  %v349_v28 = vld [vmem:[%s2365_s16 + $0x128] sm:$0xff]  ;;  %v390_v45 = vld [vmem:[%s2371_s10 + $0xc0] sm:$0xff]  ;;  %v393_v49 = vld [vmem:[%s2371_s10 + $0xd8] sm:$0xff] }
  0x74   : > { %1975 = vmatprep.subr.bf16.mxu1 %v2184_v0  ;;  %v361_v44 = vld [vmem:[%s2365_s16 + $0x188] sm:$0xff]  ;;  %v397_v50 = vld [vmem:[%s2371_s10 + $0xf8] sm:$0xff]  ;;  %v396_v54 = vld [vmem:[%s2371_s10 + $0xf0] sm:$0xff] }
  0x75   : > { %1842 = vmatmul.mubr.msk.f32.gmra.mrb[14].mxu1 %vm456_vm0, %v359_v12  ;;  %v337_v12 = vld [vmem:[%s2365_s16 + $0xc8] sm:$0xff]  ;;  %v374_v6 = vld [vmem:[%s2371_s10 + $0x40] sm:$0xff]  ;;  %v377_v7 = vld [vmem:[%s2371_s10 + $0x58] sm:$0xff] }
  0x76   : > { %1930 = vmatpush1.bf16.msra.mxu0 %v1929_v1  ;;  %1844 = vmatprep.mubr.msk.f32.mxu1 %vm456_vm0, %v362_v14  ;;  %v867_v1 = vld [vmem:[%s3076_s3 + $0xe0] sm:$0xff]  ;;  %v399_v59 = vld [vmem:[%s2371_s10 + $0x108] sm:$0xff] }
  0x77   : > { %1931 = vmatprep.subr.bf16.mxu0 %v2184_v0  ;;  %1977 = vmatpush1.bf16.msra.mxu1 %v1976_v34  ;;  %v1997_v5 = vpack.c.bf16 %v868_v2, %v867_v1  ;;  %v370_v14 = vld [vmem:[%s2371_s10 + $0x20] sm:$0xff]  ;;  %v385_v34 = vld [vmem:[%s2371_s10 + $0x98] sm:$0xff]  ;;  %v371_v1 = vld [vmem:[%s2371_s10 + $0x28] sm:$0xff] }
  0x78   : > { %1978 = vmatprep.subr.bf16.mxu1 %v2184_v0  ;;  %v406_v2 = vld [vmem:[%s2371_s10 + $0x140] sm:$0xff] }
  0x79   : > { %1845 = vmatmul.mubr.msk.f32.gmra.mrb[16].mxu1 %vm456_vm0, %v365_v20  ;;  %v343_v20 = vld [vmem:[%s2365_s16 + $0xf8] sm:$0xff] }
  0x7a   : > { %1933 = vmatpush1.bf16.msra.mxu0 %v1932_v9  ;;  %993 = vmatprep.mubr.f32.mxu1 %v367_v24  ;;  %v334_v9 = vld [vmem:[%s2365_s16 + $0xb0] sm:$0xff] }
  0x7b   : > { %1934 = vmatprep.subr.bf16.mxu0 %v2184_v0  ;;  %1980 = vmatpush1.bf16.msra.mxu1 %v1979_v38  ;;  %v346_v24 = vld [vmem:[%s2365_s16 + $0x110] sm:$0xff] }
  0x7c   : > { %1981 = vmatprep.subr.bf16.mxu1 %v2184_v0  ;;  %v388_v38 = vld [vmem:[%s2371_s10 + $0xb0] sm:$0xff] }
  0x7e   : > { %1936 = vmatpush1.bf16.msra.mxu0 %v1935_v17  ;;  %v369_v17 = vld [vmem:[%s2371_s10 + $0x18] sm:$0xff] }
  0x7f   : > { %1937 = vmatprep.subr.bf16.mxu0 %v2184_v0  ;;  %1983 = vmatpush1.bf16.msra.mxu1 %v1982_v43  ;;  %v357_v43 = vld [vmem:[%s2365_s16 + $0x168] sm:$0xff] }
  0x80   : > { %1984 = vmatprep.subr.bf16.mxu1 %v2184_v0 }
  0x82   : > { %1939 = vmatpush1.bf16.msra.mxu0 %v1938_v25  ;;  %v375_v25 = vld [vmem:[%s2371_s10 + $0x48] sm:$0xff] }
  0x83   : > { %1940 = vmatprep.subr.bf16.mxu0 %v2184_v0  ;;  %1986 = vmatpush1.bf16.msra.mxu1 %v1985_v48  ;;  %v364_v48 = vld [vmem:[%s2365_s16 + $0x1a0] sm:$0xff] }
  0x84   : > { %1987 = vmatprep.subr.bf16.mxu1 %v2184_v0 }
  0x86   : > { %1942 = vmatpush1.bf16.msra.mxu0 %v1941_v31  ;;  %v348_v31 = vld [vmem:[%s2365_s16 + $0x120] sm:$0xff] }
  0x87   : > { %1943 = vmatprep.subr.bf16.mxu0 %v2184_v0  ;;  %1989 = vmatpush1.bf16.msra.mxu1 %v1988_v53  ;;  %v872_v53 = vld [vmem:[%s3076_s3 + $0x108] sm:$0xff] }
  0x88   : > { %1990 = vmatprep.subr.bf16.mxu1 %v2184_v0 }
  0x8a   : > { %1945 = vmatpush1.bf16.msra.mxu0 %v1944_v37  ;;  %v384_v37 = vld [vmem:[%s2371_s10 + $0x90] sm:$0xff] }
  0x8b   : > { %1992 = vmatpush1.bf16.msra.mxu1 %v1991_v58  ;;  %v874_v58 = vld [vmem:[%s3076_s3 + $0x118] sm:$0xff] }
  0x8c   : > { %1993 = vmatprep.subr.bf16.mxu1 %v2184_v0 }
  0x8d   : > { %576 = vmatmul.mubr.f32.vlgmr.msra.gmra.mrb[0].mxu0 %v312_v41  ;;  %v387_v41 = vld [vmem:[%s2371_s10 + $0xa8] sm:$0xff] }
  0x8e   : > { %580 = vmatprep.mubr.f32.mxu0 %v316_v42  ;;  %v391_v42 = vld [vmem:[%s2371_s10 + $0xc8] sm:$0xff] }
  0x8f   : > { %1995 = vmatpush1.bf16.msra.mxu1 %v1994_v63  ;;  %v368_v63 = vld [vmem:[%s2371_s10 + $0x10] sm:$0xff] }
  0x90   : > { %1996 = vmatprep.subr.bf16.mxu1 %v2184_v0 }
  0x91   : > { %581 = vmatmul.mubr.f32.gmra.mrb[2].mxu0 %v315_v46  ;;  %v394_v46 = vld [vmem:[%s2371_s10 + $0xe0] sm:$0xff] }
  0x92   : > { %585 = vmatprep.mubr.f32.mxu0 %v319_v47  ;;  %v360_v47 = vld [vmem:[%s2365_s16 + $0x180] sm:$0xff] }
  0x93   : > { %1998 = vmatpush1.bf16.msra.mxu1 %v1997_v5  ;;  %v408_v5 = vld [vmem:[%s2371_s10 + $0x150] sm:$0xff] }
  0x94   : > { %1999 = vmatprep.subr.bf16.mxu1 %v2184_v0 }
  0x95   : > { %586 = vmatmul.mubr.f32.gmra.mrb[4].mxu0 %v318_v51  ;;  %v363_v51 = vld [vmem:[%s2365_s16 + $0x198] sm:$0xff] }
  0x96   : > { %590 = vmatprep.mubr.f32.mxu0 %v322_v52  ;;  %v871_v52 = vld [vmem:[%s3076_s3 + $0x100] sm:$0xff] }
  0x97   : > { %2001 = vmatpush1.bf16.msra.mxu1 %v2000_v10  ;;  %v2002_v55 = vpack.c.bf16 %v872_v53, %v871_v52  ;;  %v415_v10 = vld [vmem:[%s2371_s10 + $0x188] sm:$0xff] }
  0x99   : > { %591 = vmatmul.mubr.f32.gmra.mrb[6].mxu0 %v321_v56  ;;  %2003 = vmatprep.subr.bf16.mxu0 %v2002_v55  ;;  %v400_v56 = vld [vmem:[%s2371_s10 + $0x110] sm:$0xff] }
  0x9a   : > { %595 = vmatprep.mubr.f32.mxu0 %v325_v57  ;;  %994 = vmatmul.mubr.f32.vlgmr.msra.gmra.mrb[18].mxu1 %v366_v13  ;;  %v873_v57 = vld [vmem:[%s3076_s3 + $0x110] sm:$0xff] }
  0x9b   : > { %998 = vmatprep.mubr.f32.mxu1 %v370_v14  ;;  %2016 = vmatprep.subr.bf16.mxu1 %v2002_v55  ;;  %v2006_v60 = vpack.c.bf16 %v874_v58, %v873_v57  ;;  %v380_v13 = vld [vmem:[%s2371_s10 + $0x70] sm:$0xff]  ;;  %v417_v14 = vld [vmem:[%s2371_s10 + $0x198] sm:$0xff] }
  0x9c   : > { %2005 = vmatpush3.bf16.msra.mxu0 %v2002_v55  ;;  %2018 = vmatpush3.bf16.msra.mxu1 %v2002_v55 }
  0x9d   : > { %596 = vmatmul.mubr.f32.gmra.mrb[8].mxu0 %v324_v61  ;;  %2007 = vmatprep.subr.bf16.mxu0 %v2006_v60  ;;  %v403_v61 = vld [vmem:[%s2371_s10 + $0x128] sm:$0xff] }
  0x9e   : > { %600 = vmatprep.mubr.f32.mxu0 %v328_v62  ;;  %999 = vmatmul.mubr.f32.gmra.mrb[20].mxu1 %v369_v17  ;;  %v402_v62 = vld [vmem:[%s2371_s10 + $0x120] sm:$0xff]  ;;  %v413_v17 = vld [vmem:[%s2371_s10 + $0x178] sm:$0xff] }
  0x9f   : > { %1003 = vmatprep.mubr.f32.mxu1 %v373_v18  ;;  %2017 = vmatprep.subr.bf16.mxu1 %v2006_v60  ;;  %v386_v18 = vld [vmem:[%s2371_s10 + $0xa0] sm:$0xff] }
  0xa0   : > { %2009 = vmatpush3.bf16.msra.mxu0 %v2006_v60  ;;  %2019 = vmatpush3.bf16.msra.mxu1 %v2006_v60 }
  0xa1   : > { %601 = vmatmul.mubr.f32.gmra.mrb[10].mxu0 %v327_v3  ;;  %2010 = vmatprep.subr.bf16.mxu1 %v2184_v0  ;;  %v405_v3 = vld [vmem:[%s2371_s10 + $0x138] sm:$0xff] }
  0xa2   : > { %605 = vmatprep.mubr.f32.mxu0 %v331_v4  ;;  %1004 = vmatmul.mubr.f32.gmra.mrb[22].mxu1 %v372_v21  ;;  %v409_v4 = vld [vmem:[%s2371_s10 + $0x158] sm:$0xff]  ;;  %v395_v21 = vld [vmem:[%s2371_s10 + $0xe8] sm:$0xff] }
  0xa3   : > { %1008 = vmatprep.mubr.f32.mxu1 %v376_v22  ;;  %v398_v22 = vld [vmem:[%s2371_s10 + $0x100] sm:$0xff] }
  0xa5   : > { %606 = vmatmul.mubr.f32.gmra.mrb[12].mxu0 %v330_v8  ;;  %v412_v8 = vld [vmem:[%s2371_s10 + $0x170] sm:$0xff] }
  0xa6   : > { %610 = vmatprep.mubr.f32.mxu0 %v334_v9  ;;  %1009 = vmatmul.mubr.f32.gmra.mrb[24].mxu1 %v375_v25  ;;  %v411_v9 = vld [vmem:[%s2371_s10 + $0x168] sm:$0xff] }
  0xa7   : > { %1013 = vmatprep.mubr.f32.mxu1 %v379_v26  ;;  %v407_v25 = vld [vmem:[%s2371_s10 + $0x148] sm:$0xff]  ;;  %v416_v26 = vld [vmem:[%s2371_s10 + $0x190] sm:$0xff] }
  0xa9   : > { %611 = vmatmul.mubr.f32.gmra.mrb[14].mxu0 %v333_v11  ;;  %v414_v11 = vld [vmem:[%s2371_s10 + $0x180] sm:$0xff] }
  0xaa   : > { %615 = vmatprep.mubr.f32.mxu0 %v337_v12  ;;  %1014 = vmatmul.mubr.f32.gmra.mrb[26].mxu1 %v378_v29  ;;  %v418_v12 = vld [vmem:[%s2371_s10 + $0x1a0] sm:$0xff] }
  0xab   : > { %1018 = vmatprep.mubr.f32.mxu1 %v382_v30  ;;  %v1325_v30 = vld [vmem:[%s3077_s4] sm:$0xff] }
  0xad   : > { %616 = vmatmul.mubr.f32.gmra.mrb[16].mxu0 %v336_v15  ;;  %v383_v15 = vld [vmem:[%s2371_s10 + $0x88] sm:$0xff] }
  0xae   : > { %620 = vmatprep.mubr.f32.mxu0 %v340_v16  ;;  %1019 = vmatmul.mubr.f32.gmra.mrb[28].mxu1 %v381_v33  ;;  %v410_v16 = vld [vmem:[%s2371_s10 + $0x160] sm:$0xff] }
  0xaf   : > { %1023 = vmatprep.mubr.f32.mxu1 %v385_v34  ;;  %v1327_v34 = vld [vmem:[%s3077_s4 + $0x10] sm:$0xff] }
  0xb1   : > { %621 = vmatmul.mubr.f32.gmra.mrb[18].mxu0 %v339_v19  ;;  %v389_v19 = vld [vmem:[%s2371_s10 + $0xb8] sm:$0xff] }
  0xb2   : > { %625 = vmatprep.mubr.f32.mxu0 %v343_v20  ;;  %1024 = vmatmul.mubr.f32.gmra.mrb[30].mxu1 %v384_v37  ;;  %v392_v20 = vld [vmem:[%s2371_s10 + $0xd0] sm:$0xff] }
  0xb3   : > { %1028 = vmatprep.mubr.f32.mxu1 %v388_v38  ;;  %v2186_v38 = vmov 0.0  }
  0xb5   : > { %626 = vmatmul.mubr.f32.gmra.mrb[20].mxu0 %v342_v23  ;;  %v401_v23 = vld [vmem:[%s2371_s10 + $0x118] sm:$0xff] }
  0xb6   : > { %630 = vmatprep.mubr.f32.mxu0 %v346_v24  ;;  %1029 = vmatmul.mubr.f32.gmra.mrb[32].mxu1 %v387_v41  ;;  %v404_v24 = vld [vmem:[%s2371_s10 + $0x130] sm:$0xff] }
  0xb7   : > { %1033 = vmatprep.mubr.f32.mxu1 %v391_v42 }
  0xb9   : > { %631 = vmatmul.mubr.f32.gmra.mrb[22].mxu0 %v345_v27  ;;  %v419_v27 = vld [vmem:[%s2371_s10 + $0x1a8] sm:$0xff] }
  0xba   : > { %635 = vmatprep.mubr.f32.mxu0 %v349_v28  ;;  %1034 = vmatmul.mubr.f32.gmra.mrb[34].mxu1 %v390_v45 }
  0xbb   : > { %1038 = vmatprep.mubr.f32.mxu1 %v394_v46 }
  0xbd   : > { %636 = vmatmul.mubr.f32.gmra.mrb[24].mxu0 %v348_v31  ;;  %v1326_v31 = vld [vmem:[%s3077_s4 + $0x8] sm:$0xff] }
  0xbe   : > { %640 = vmatprep.mubr.f32.mxu0 %v352_v32  ;;  %1039 = vmatmul.mubr.f32.gmra.mrb[36].mxu1 %v393_v49  ;;  %v2011_v32 = vpack.c.bf16 %v1326_v31, %v1325_v30 }
  0xbf   : > { %1043 = vmatprep.mubr.f32.mxu1 %v397_v50 }
  0xc1   : > { %641 = vmatmul.mubr.f32.gmra.mrb[26].mxu0 %v351_v35  ;;  %v1328_v35 = vld [vmem:[%s3077_s4 + $0x18] sm:$0xff] }
  0xc2   : > { %645 = vmatprep.mubr.f32.mxu0 %v355_v36  ;;  %1044 = vmatmul.mubr.f32.gmra.mrb[38].mxu1 %v396_v54  ;;  %v2014_v37 = vpack.c.bf16 %v1328_v35, %v1327_v34 }
  0xc3   : > { %1048 = vmatprep.mubr.f32.mxu1 %v400_v56 }
  0xc5   : > { %646 = vmatmul.mubr.f32.gmra.mrb[28].mxu0 %v354_v39 }
  0xc6   : > { %650 = vmatprep.mubr.f32.mxu0 %v358_v40  ;;  %1049 = vmatmul.mubr.f32.gmra.mrb[40].mxu1 %v399_v59 }
  0xc7   : > { %1053 = vmatprep.mubr.f32.mxu1 %v403_v61 }
  0xc9   : > { %651 = vmatmul.mubr.f32.gmra.mrb[30].mxu0 %v357_v43 }
  0xca   : > { %655 = vmatprep.mubr.f32.mxu0 %v361_v44  ;;  %1054 = vmatmul.mubr.f32.gmra.mrb[42].mxu1 %v402_v62 }
  0xcb   : > { %1058 = vmatprep.mubr.f32.mxu1 %v406_v2 }
  0xcd   : > { %656 = vmatmul.mubr.f32.gmra.mrb[32].mxu0 %v360_v47 }
  0xce   : > { %660 = vmatprep.mubr.f32.mxu0 %v364_v48  ;;  %1059 = vmatmul.mubr.f32.gmra.mrb[44].mxu1 %v405_v3 }
  0xcf   : > { %1063 = vmatprep.mubr.f32.mxu1 %v409_v4 }
  0xd1   : > { %661 = vmatmul.mubr.f32.gmra.mrb[34].mxu0 %v363_v51 }
  0xd2   : > { %1855 = vmatprep.mubr.msk.f32.mxu0 %vm456_vm0, %v368_v63  ;;  %1064 = vmatmul.mubr.f32.gmra.mrb[46].mxu1 %v408_v5 }
  0xd3   : > { %1068 = vmatprep.mubr.f32.mxu1 %v412_v8 }
  0xd5   : > { %1856 = vmatmul.mubr.msk.f32.vlgmr.msra.gmra.mrb[36].mxu0 %vm456_vm0, %v371_v1 }
  0xd6   : > { %1858 = vmatprep.mubr.msk.f32.mxu0 %vm456_vm0, %v374_v6  ;;  %1069 = vmatmul.mubr.f32.gmra.mrb[48].mxu1 %v411_v9 }
  0xd7   : > { %1073 = vmatprep.mubr.f32.mxu1 %v415_v10 }
  0xd9   : > { %1859 = vmatmul.mubr.msk.f32.gmra.mrb[38].mxu0 %vm456_vm0, %v377_v7 }
  0xda   : > { %1074 = vmatmul.mubr.f32.gmra.mrb[50].mxu1 %v414_v11  ;;  %1861 = vmatprep.mubr.msk.f32.mxu0 %vm456_vm0, %v380_v13 }
  0xdb   : > { %1078 = vmatprep.mubr.f32.mxu1 %v418_v12 }
  0xdd   : > { %1862 = vmatmul.mubr.msk.f32.gmra.mrb[40].mxu0 %vm456_vm0, %v383_v15 }
  0xde   : > { %1079 = vmatmul.mubr.f32.gmra.mrb[52].mxu1 %v417_v14  ;;  %1864 = vmatprep.mubr.msk.f32.mxu0 %vm456_vm0, %v386_v18 }
  0xdf   : > { %1876 = vmatprep.mubr.msk.f32.mxu1 %vm456_vm0, %v410_v16 }
  0xe1   : > { %1865 = vmatmul.mubr.msk.f32.gmra.mrb[42].mxu0 %vm456_vm0, %v389_v19 }
  0xe2   : > { %1877 = vmatmul.mubr.msk.f32.vlgmr.msra.gmra.mrb[54].mxu1 %vm456_vm0, %v413_v17  ;;  %1867 = vmatprep.mubr.msk.f32.mxu0 %vm456_vm0, %v392_v20 }
  0xe3   : > { %1879 = vmatprep.mubr.msk.f32.mxu1 %vm456_vm0, %v416_v26  ;;  %2012 = vmatpush3.bf16.msra.mxu1 %v2011_v32 }
  0xe4   : > { %2013 = vmatprep.subr.bf16.mxu1 %v2184_v0 }
  0xe5   : > { %1868 = vmatmul.mubr.msk.f32.gmra.mrb[44].mxu0 %vm456_vm0, %v395_v21 }
  0xe6   : > { %1870 = vmatprep.mubr.msk.f32.mxu0 %vm456_vm0, %v398_v22  ;;  %1880 = vmatmul.mubr.msk.f32.gmra.mrb[56].mxu1 %vm456_vm0, %v419_v27 }
  0xe7   : > { %1890 = vmatprep.mubr.msk.f32.mxu1 %vm2185_vm1, %v2186_v38  ;;  %2015 = vmatpush3.bf16.msra.mxu1 %v2014_v37 }
  0xe8   : > { %1893 = vmatprep.subr.mxu1 %v2186_v38 }
  0xe9   : > { %1871 = vmatmul.mubr.msk.f32.gmra.mrb[46].mxu0 %vm456_vm0, %v401_v23 }
  0xea   : > { %1873 = vmatprep.mubr.msk.f32.mxu0 %vm456_vm0, %v404_v24 }
  0xed   : > { %1874 = vmatmul.mubr.msk.f32.gmra.mrb[48].mxu0 %vm456_vm0, %v407_v25 }
 0x12c   : > { %v1822_v28 = vpop.f32.mrb[0].mxu1 }
 0x12d   : > { %v732_v29 = vpop.f32.mrb[1].mxu1 }
 0x130   : > { %v1825_v33 = vpop.f32.mrb[2].mxu1 }
 0x131   : > { %v742_v36 = vpop.f32.mrb[3].mxu1 }
 0x134   : > { %v1828_v39 = vpop.f32.mrb[4].mxu1 }
 0x135   : > { %v752_v40 = vpop.f32.mrb[5].mxu1 }
 0x138   : > { %v1831_v41 = vpop.f32.mrb[6].mxu1 }
 0x139   : > { %v762_v42 = vpop.f32.mrb[7].mxu1 }
 0x13c   : > { %v1834_v43 = vpop.f32.mrb[8].mxu1 }
 0x13d   : > { %v772_v44 = vpop.f32.mrb[9].mxu1 }
 0x140   : > { %v2786_v45 = vpop.f32.mrb[10].mxu1 }
 0x141   : > { %v782_v46 = vpop.f32.mrb[11].mxu1 }
 0x144   : > { %v2788_v47 = vpop.f32.mrb[12].mxu1 }
 0x145   : > { %v2790_v0 = vpop.f32.mrb[13].mxu1 }
 0x148   : > { %v2792_v48 = vpop.f32.mrb[14].mxu1 }
 0x149   : > { %v2794_v49 = vpop.f32.mrb[15].mxu1 }
 0x14c   : > { %v2796_v50 = vpop.f32.mrb[16].mxu1 }
 0x14d   : > { %v2798_v51 = vpop.f32.mrb[17].mxu1 }
 0x160   : > { %v577_v52 = vpop.f32.mrb[0].mxu0 }
 0x161   : > { %v733_v53 = vadd.f32 %v732_v29, %v577_v52  ;;  %v579_v54 = vpop.f32.mrb[1].mxu0 }
 0x163   : > { %v2806_v22 = vmax.f32 %v733_v53, 0.0 }
 0x164   : > { %v582_v55 = vpop.f32.mrb[2].mxu0 }
 0x165   : > { %v738_v56 = vadd.f32 %v1822_v28, %v582_v55  ;;  %v584_v57 = vpop.f32.mrb[3].mxu0  ;;  %v1239_v31 = vsel %vm456_vm0, %v2806_v22, 0.0 }
 0x167   : > { %v2804_v19 = vmax.f32 %v738_v56, 0.0 }
 0x168   : > { %v587_v58 = vpop.f32.mrb[4].mxu0 }
 0x169   : > { %v743_v59 = vadd.f32 %v742_v36, %v587_v58  ;;  %v589_v60 = vpop.f32.mrb[5].mxu0  ;;  %v1240_v27 = vsel %vm456_vm0, %v2804_v19, 0.0 }
 0x16a   : > { %v1241_v36 = vadd.f32 %v1240_v27, %v1239_v31 }
 0x16b   : > { %v2808_v23 = vmax.f32 %v743_v59, 0.0 }
 0x16c   : > { %v592_v61 = vpop.f32.mrb[6].mxu0 }
 0x16d   : > { %v748_v62 = vadd.f32 %v1825_v33, %v592_v61  ;;  %v594_v63 = vpop.f32.mrb[7].mxu0  ;;  %v2800_v13 = vpop.f32.mrb[18].mxu1  ;;  %v1242_v32 = vsel %vm456_vm0, %v2808_v23, 0.0 }
 0x16e   : > { %v997_v14 = vpop.f32.mrb[19].mxu1 }
 0x16f   : > { %v2814_v28 = vmax.f32 %v748_v62, 0.0 }
 0x170   : > { %v597_v1 = vpop.f32.mrb[8].mxu0 }
 0x171   : > { %v753_v2 = vadd.f32 %v752_v40, %v597_v1  ;;  %v599_v3 = vpop.f32.mrb[9].mxu0  ;;  %v2802_v18 = vpop.f32.mrb[20].mxu1 }
 0x172   : > { %v1002_v20 = vpop.f32.mrb[21].mxu1 }
 0x173   : > { %v2820_v33 = vmax.f32 %v753_v2, 0.0 }
 0x174   : > { %v602_v4 = vpop.f32.mrb[10].mxu0 }
 0x175   : > { %v758_v5 = vadd.f32 %v1828_v39, %v602_v4  ;;  %v604_v6 = vpop.f32.mrb[11].mxu0  ;;  %v2810_v26 = vpop.f32.mrb[22].mxu1  ;;  %v1244_v39 = vsel %vm456_vm0, %v2814_v28, 0.0 }
 0x176   : > { %v1007_v29 = vpop.f32.mrb[23].mxu1 }
 0x177   : > { %v2826_v40 = vmax.f32 %v758_v5, 0.0 }
 0x178   : > { %v607_v7 = vpop.f32.mrb[12].mxu0 }
 0x179   : > { %v763_v8 = vadd.f32 %v762_v42, %v607_v7  ;;  %v609_v9 = vpop.f32.mrb[13].mxu0  ;;  %v2822_v37 = vpop.f32.mrb[24].mxu1  ;;  %v1243_v42 = vadd.f32 %v1242_v32, %v1241_v36  ;;  %v1248_v56 = vsel %vm456_vm0, %v2826_v40, 0.0 }
 0x17b   : > { %v2830_v52 = vmax.f32 %v763_v8, 0.0  ;;  %v1245_v54 = vadd.f32 %v1244_v39, %v1243_v42  ;;  %v1282_v42 = vsel %vm456_vm0, %v2806_v22, -inf }
 0x17c   : > { %v612_v10 = vpop.f32.mrb[14].mxu0 }
 0x17d   : > { %v768_v11 = vadd.f32 %v1831_v41, %v612_v10  ;;  %v614_v12 = vpop.f32.mrb[15].mxu0  ;;  %v1012_v41 = vpop.f32.mrb[25].mxu1  ;;  %v1250_v61 = vsel %vm456_vm0, %v2830_v52, 0.0 }
 0x17e   : > { %v2833_v55 = vpop.f32.mrb[26].mxu1 }
 0x17f   : > { %v2837_v57 = vmax.f32 %v768_v11, 0.0  ;;  %v1017_v58 = vpop.f32.mrb[27].mxu1 }
 0x180   : > { %v617_v15 = vpop.f32.mrb[16].mxu0 }
 0x181   : > { %v773_v16 = vadd.f32 %v772_v44, %v617_v15  ;;  %v619_v17 = vpop.f32.mrb[17].mxu0  ;;  %v1246_v44 = vsel %vm456_vm0, %v2820_v33, 0.0  ;;  %v2844_v2 = vpop.f32.mrb[28].mxu1  ;;  %v1252_v3 = vsel %vm456_vm0, %v2837_v57, 0.0 }
 0x182   : > { %v1247_v59 = vadd.f32 %v1246_v44, %v1245_v54  ;;  %v1022_v5 = vpop.f32.mrb[29].mxu1  ;;  %v1290_v54 = vsel %vm456_vm0, %v2830_v52, -inf }
 0x183   : > { %v2841_v62 = vmax.f32 %v773_v16, 0.0 }
 0x184   : > { %v622_v21 = vpop.f32.mrb[18].mxu0  ;;  %v1249_v1 = vadd.f32 %v1248_v56, %v1247_v59  ;;  %v1283_v59 = vsel %vm456_vm0, %v2804_v19, -inf }
 0x185   : > { %v778_v24 = vadd.f32 %v1834_v43, %v622_v21  ;;  %v624_v25 = vpop.f32.mrb[19].mxu0  ;;  %v1254_v8 = vsel %vm456_vm0, %v2841_v62, 0.0  ;;  %v2855_v12 = vpop.f32.mrb[30].mxu1 }
 0x186   : > { %v1251_v6 = vadd.f32 %v1250_v61, %v1249_v1  ;;  %v1027_v16 = vpop.f32.mrb[31].mxu1  ;;  %v1285_v61 = vsel %vm456_vm0, %v2814_v28, -inf }
 0x187   : > { %v2848_v4 = vmax.f32 %v778_v24, 0.0 }
 0x188   : > { %v627_v30 = vpop.f32.mrb[20].mxu0  ;;  %v1253_v11 = vadd.f32 %v1252_v3, %v1251_v6  ;;  %v1292_v3 = vsel %vm456_vm0, %v2837_v57, -inf }
 0x189   : > { %v783_v34 = vadd.f32 %v782_v46, %v627_v30  ;;  %v629_v35 = vpop.f32.mrb[21].mxu0  ;;  %v1256_v14 = vsel %vm456_vm0, %v2848_v4, 0.0  ;;  %v2866_v29 = vpop.f32.mrb[32].mxu1  ;;  %v1296_v16 = vsel %vm456_vm0, %v2848_v4, -inf }
 0x18a   : > { %v1255_v17 = vadd.f32 %v1254_v8, %v1253_v11  ;;  %v1032_v32 = vpop.f32.mrb[33].mxu1 }
 0x18b   : > { %v2852_v9 = vmax.f32 %v783_v34, 0.0 }
 0x18c   : > { %v632_v43 = vpop.f32.mrb[22].mxu0  ;;  %v1257_v27 = vadd.f32 %v1256_v14, %v1255_v17 }
 0x18d   : > { %v788_v53 = vadd.f32 %v2786_v45, %v632_v43  ;;  %v634_v46 = vpop.f32.mrb[23].mxu0  ;;  %v1258_v21 = vsel %vm456_vm0, %v2852_v9, 0.0  ;;  %v1286_v43 = vsel %vm456_vm0, %v2820_v33, -inf }
 0x18e   : > { %v1259_v34 = vadd.f32 %v1258_v21, %v1257_v27  ;;  %v1288_v46 = vsel %vm456_vm0, %v2826_v40, -inf  ;;  %v1287_v1 = vmax.f32 %v1282_v42, %v1286_v43 }
 0x18f   : > { %v2859_v15 = vmax.f32 %v788_v53, 0.0  ;;  %v2881_v53 = vpop.f32.mrb[34].mxu1  ;;  %v1289_v8 = vmax.f32 %v1283_v59, %v1288_v46 }
 0x190   : > { %v637_v60 = vpop.f32.mrb[24].mxu0  ;;  %v1037_v58 = vpop.f32.mrb[35].mxu1 }
 0x191   : > { %v793_v63 = vadd.f32 %v2790_v0, %v637_v60  ;;  %v639_v45 = vpop.f32.mrb[25].mxu0  ;;  %v1260_v30 = vsel %vm456_vm0, %v2859_v15, 0.0  ;;  %v1284_v60 = vsel %vm456_vm0, %v2808_v23, -inf  ;;  %v2904_v14 = vpop.f32.mrb[36].mxu1  ;;  %v1300_v17 = vsel %vm456_vm0, %v2859_v15, -inf }
 0x192   : > { %v1261_v44 = vadd.f32 %v1260_v30, %v1259_v34  ;;  %v1297_v43 = vmax.f32 %v1289_v8, %v1296_v16 }
 0x193   : > { %v2863_v24 = vmax.f32 %v793_v63, 0.0 }
 0x194   : > { %v642_v7 = vpop.f32.mrb[26].mxu0 }
 0x195   : > { %v798_v10 = vadd.f32 %v2788_v47, %v642_v7  ;;  %v644_v0 = vpop.f32.mrb[27].mxu0  ;;  %v1262_v36 = vsel %vm456_vm0, %v2863_v24, 0.0  ;;  %v1302_v27 = vsel %vm456_vm0, %v2863_v24, -inf }
 0x196   : > { %v1263_v63 = vadd.f32 %v1262_v36, %v1261_v44  ;;  %v1294_v0 = vsel %vm456_vm0, %v2841_v62, -inf }
 0x197   : > { %v2870_v31 = vmax.f32 %v798_v10, 0.0  ;;  %v1291_v10 = vmax.f32 %v1284_v60, %v1290_v54  ;;  %v1295_v42 = vmax.f32 %v1287_v1, %v1294_v0 }
 0x198   : > { %v647_v20 = vpop.f32.mrb[28].mxu0 }
 0x199   : > { %v803_v25 = vadd.f32 %v2794_v49, %v647_v20  ;;  %v649_v47 = vpop.f32.mrb[29].mxu0  ;;  %v1264_v56 = vsel %vm456_vm0, %v2870_v31, 0.0  ;;  %v1304_v34 = vsel %vm456_vm0, %v2870_v31, -inf  ;;  %v1303_v60 = vmax.f32 %v1295_v42, %v1302_v27 }
 0x19a   : > { %v1265_v11 = vadd.f32 %v1264_v56, %v1263_v63  ;;  %v1298_v47 = vsel %vm456_vm0, %v2852_v9, -inf }
 0x19b   : > { %v2874_v39 = vmax.f32 %v803_v25, 0.0  ;;  %v1293_v25 = vmax.f32 %v1285_v61, %v1292_v3  ;;  %v1299_v54 = vmax.f32 %v1291_v10, %v1298_v47  ;;  %v1305_v61 = vmax.f32 %v1297_v43, %v1304_v34 }
 0x19c   : > { %v652_v35 = vpop.f32.mrb[30].mxu0 }
 0x19d   : > { %v808_v41 = vadd.f32 %v2792_v48, %v652_v35  ;;  %v654_v49 = vpop.f32.mrb[31].mxu0  ;;  %v1266_v5 = vsel %vm456_vm0, %v2874_v39, 0.0  ;;  %v1301_v44 = vmax.f32 %v1293_v25, %v1300_v17  ;;  %v1306_v56 = vsel %vm456_vm0, %v2874_v39, -inf }
 0x19e   : > { %v1267_v30 = vadd.f32 %v1266_v5, %v1265_v11  ;;  %v1307_v3 = vmax.f32 %v1299_v54, %v1306_v56 }
 0x19f   : > { %v2889_v48 = vmax.f32 %v808_v41, 0.0 }
 0x1a0   : > { %v657_v45 = vpop.f32.mrb[32].mxu0 }
 0x1a1   : > { %v813_v6 = vadd.f32 %v2798_v51, %v657_v45  ;;  %v659_v7 = vpop.f32.mrb[33].mxu0  ;;  %v1268_v20 = vsel %vm456_vm0, %v2889_v48, 0.0  ;;  %v1042_v51 = vpop.f32.mrb[37].mxu1  ;;  %v1308_v35 = vsel %vm456_vm0, %v2889_v48, -inf }
 0x1a2   : > { %v1269_v46 = vadd.f32 %v1268_v20, %v1267_v30  ;;  %v1309_v63 = vmax.f32 %v1301_v44, %v1308_v35  ;;  %v2935_v47 = vpop.f32.mrb[38].mxu1 }
 0x1a3   : > { %v2912_v21 = vmax.f32 %v813_v6, 0.0 }
 0x1a4   : > { %v662_v32 = vpop.f32.mrb[34].mxu0  ;;  %v1315_v8 = vmax.f32 %v1307_v3, %v1309_v63 }
 0x1a5   : > { %v1270_v36 = vsel %vm456_vm0, %v2912_v21, 0.0  ;;  %v818_v41 = vadd.f32 %v2796_v50, %v662_v32  ;;  %v664_v49 = vpop.f32.mrb[35].mxu0  ;;  %v1310_v58 = vsel %vm456_vm0, %v2912_v21, -inf  ;;  %v1047_v32 = vpop.f32.mrb[39].mxu1 }
 0x1a6   : > { %v1271_v45 = vadd.f32 %v1270_v36, %v1269_v46  ;;  %v1311_v5 = vmax.f32 %v1303_v60, %v1310_v58  ;;  %v1050_v36 = vpop.f32.mrb[40].mxu1  ;;  %v1403_v46 = vld [vmem:[%s3078_s5] sm:$0x3] }
 0x1a7   : > { %v2929_v59 = vmax.f32 %v818_v41, 0.0  ;;  %v1052_v49 = vpop.f32.mrb[41].mxu1 }
 0x1a8   : > { %v2937_v44 = vpop.f32.mrb[42].mxu1  ;;  %v1857_v56 = vpop.f32.mrb[36].mxu0 }
 0x1a9   : > { %v1272_v50 = vsel %vm456_vm0, %v2929_v59, 0.0  ;;  %v1312_v1 = vsel %vm456_vm0, %v2929_v59, -inf  ;;  %v1057_v58 = vpop.f32.mrb[43].mxu1  ;;  %v1156_v60 = vadd.f32 %v1857_v56, %v2802_v18 }
 0x1aa   : > { %v1273_v6 = vadd.f32 %v1272_v50, %v1271_v45  ;;  %v1313_v7 = vmax.f32 %v1305_v61, %v1312_v1  ;;  %v1150_v61 = vpop.f32.mrb[37].mxu0  ;;  %v1060_v45 = vpop.f32.mrb[44].mxu1 }
 0x1ab   : > { %v1151_v63 = vadd.f32 %v1150_v61, %v2800_v13  ;;  %1534 = vrot.lane.b32.xlu0 %v1156_v60, %s2187_s7  ;;  %v1062_v50 = vpop.f32.mrb[45].mxu1 }
 0x1ac   : > { %v1274_v10 = vrot.slane %v1273_v6, 4  ;;  %v1314_v0 = vmax.f32 %v1311_v5, %v1313_v7  ;;  %v1065_v1 = vpop.f32.mrb[46].mxu1  ;;  %v1860_v3 = vpop.f32.mrb[38].mxu0 }
 0x1ad   : > { %v1067_v5 = vpop.f32.mrb[47].mxu1  ;;  %v1160_v18 = vpop.f32.mrb[39].mxu0 }
 0x1ae   : > { %v1275_v11 = vadd.f32 %v1274_v10, %v1273_v6  ;;  %v1316_v16 = vmax.f32 %v1314_v0, %v1315_v8  ;;  %v1166_v6 = vadd.f32 %v1860_v3, %v2822_v37  ;;  %v1161_v7 = vadd.f32 %v1160_v18, %v2810_v26  ;;  %v1070_v13 = vpop.f32.mrb[48].mxu1 }
 0x1af   : > { %1532 = vrot.lane.b32.xlu0 %v1151_v63, %s2187_s7  ;;  %v1072_v8 = vpop.f32.mrb[49].mxu1 }
 0x1b0   : > { %v1276_v17 = vrot.slane %v1275_v11, 2  ;;  %v1317_v20 = vrot.slane %v1316_v16, 4  ;;  %1538 = vrot.lane.b32.xlu1 %v1166_v6, %s2187_s7  ;;  %v1863_v0 = vpop.f32.mrb[40].mxu0 }
 0x1b2   : > { %v1277_v51 = vadd.f32 %v1276_v17, %v1275_v11  ;;  %v1318_v25 = vmax.f32 %v1316_v16, %v1317_v20  ;;  %v1176_v16 = vadd.f32 %v1863_v0, %v2844_v2  ;;  %v1170_v17 = vpop.f32.mrb[41].mxu0 }
 0x1b4   : > { %v1278_v27 = vrot.slane %v1277_v51, 1  ;;  %v1319_v30 = vrot.slane %v1318_v25, 2  ;;  %1536 = vrot.lane.b32.xlu1 %v1161_v7, %s2187_s7 }
 0x1b6   : > { %v1279_v34 = vadd.f32 %v1278_v27, %v1277_v51  ;;  %v1320_v35 = vmax.f32 %v1318_v25, %v1319_v30  ;;  %v1171_v51 = vadd.f32 %v1170_v17, %v2833_v55  ;;  %v1866_v30 = vpop.f32.mrb[42].mxu0  ;;  %v1492_v17 = vlaneseq }
 0x1b7   : > { %v1186_v32 = vadd.f32 %v1866_v30, %v2866_v29  ;;  %v1180_v2 = vpop.f32.mrb[43].mxu0 }
 0x1b8   : > { %v1321_v41 = vrot.slane %v1320_v35, 1  ;;  %v1281_v42 = vmul.f32 0.0069444445, %v1279_v34  ;;  %1542 = vrot.lane.b32.xlu1 %v1176_v16, %s2187_s7  ;;  %1540 = vrot.lane.b32.xlu0 %v1171_v51, %s2187_s7  ;;  %v1181_v34 = vadd.f32 %v1180_v2, %v2855_v12  ;;  %v1869_v55 = vpop.f32.mrb[44].mxu0 }
 0x1ba   : > { %v1322_v43 = vmax.f32 %v1320_v35, %v1321_v41  ;;  %v1196_v35 = vadd.f32 %v1869_v55, %v2904_v14  ;;  %v1190_v41 = vpop.f32.mrb[45].mxu0 }
 0x1bb   : > { %v1191_v49 = vadd.f32 %v1190_v41, %v2881_v53 }
 0x1bc   : > { %v1324_v54 = vsel %vm1323_vm2, %v1281_v42, %v1322_v43  ;;  %v1872_v42 = vpop.f32.mrb[46].mxu0 }
 0x1bd   : > { %1891 = vmatmul.mubr.msk.f32.vlgmr.msra.gmra.mrb[58].mxu1 %vm456_vm0, %v1324_v54  ;;  %v1206_v43 = vadd.f32 %v1872_v42, %v1050_v36  ;;  %v1200_v29 = vpop.f32.mrb[47].mxu0 }
 0x1be   : > { %1894 = vmatpush3.msk.msra.mxu1 %vm1408_vm3, %v1403_v46  ;;  %1895 = vmatprep.mubr.msk.f32.mxu1 %vm2185_vm1, %v2186_v38  ;;  %v1075_v38 = vpop.f32.mrb[50].mxu1  ;;  %v1201_v46 = vadd.f32 %v1200_v29, %v2935_v47 }
 0x1bf   : > { %v1077_v10 = vpop.f32.mrb[51].mxu1 }
 0x1c0   : > { %v1080_v11 = vpop.f32.mrb[52].mxu1  ;;  %v1875_v12 = vpop.f32.mrb[48].mxu0 }
 0x1c1   : > { %v1082_v20 = vpop.f32.mrb[53].mxu1  ;;  %v1216_v54 = vadd.f32 %v1875_v12, %v1060_v45  ;;  %v1210_v56 = vpop.f32.mrb[49].mxu0 }
 0x1c2   : > { %v1878_v37 = vpop.f32.mrb[54].mxu1  ;;  %v1211_v14 = vadd.f32 %v1210_v56, %v2937_v44  ;;  %v1493_v20 = vshrl.u32 %v1492_v17, 7 }
 0x1c3   : > { %v1226_v26 = vadd.f32 %v1878_v37, %v1070_v13  ;;  %v1220_v25 = vpop.f32.mrb[55].mxu1 }
 0x1c4   : > { %v1221_v27 = vadd.f32 %v1220_v25, %v1065_v1  ;;  %v1881_v53 = vpop.f32.mrb[56].mxu1 }
 0x1c5   : > { %1562 = vrot.lane.b32.xlu1 %v1226_v26, %s2187_s7  ;;  %v1236_v58 = vadd.f32 %v1881_v53, %v1080_v11  ;;  %v1230_v60 = vpop.f32.mrb[57].mxu1  ;;  %v1494_v26 = vsub.s32 0, %v1493_v20 }
 0x1c6   : > { %1560 = vrot.lane.b32.xlu0 %v1221_v27, %s2187_s7  ;;  %v1231_v36 = vadd.f32 %v1230_v60, %v1075_v38 }
 0x1c9   : > { %1546 = vrot.lane.b32.xlu1 %v1186_v32, %s2187_s7 }
 0x1ca   : > { %1544 = vrot.lane.b32.xlu0 %v1181_v34, %s2187_s7 }
 0x1cd   : > { %1550 = vrot.lane.b32.xlu1 %v1196_v35, %s2187_s7 }
 0x1ce   : > { %1548 = vrot.lane.b32.xlu0 %v1191_v49, %s2187_s7 }
 0x1d1   : > { %1554 = vrot.lane.b32.xlu1 %v1206_v43, %s2187_s7 }
 0x1d2   : > { %1552 = vrot.lane.b32.xlu0 %v1201_v46, %s2187_s7 }
 0x1d5   : > { %1558 = vrot.lane.b32.xlu1 %v1216_v54, %s2187_s7 }
 0x1d6   : > { %1556 = vrot.lane.b32.xlu0 %v1211_v14, %s2187_s7 }
 0x1d9   : > { %1566 = vrot.lane.b32.xlu1 %v1236_v58, %s2187_s7 }
 0x1da   : > { %1564 = vrot.lane.b32.xlu0 %v1231_v36, %s2187_s7 }
 0x21d   : > { %v1535_v3 = vpop.permute.xlu0 %1534 }
 0x221   : > { %v1533_v7 = vpop.permute.xlu0 %1532 }
 0x222   : > { %v1539_v5 = vpop.permute.xlu1 %1538 }
 0x226   : > { %v1537_v13 = vpop.permute.xlu1 %1536 }
 0x22a   : > { %v1541_v8 = vpop.permute.xlu0 %1540  ;;  %v1543_v38 = vpop.permute.xlu1 %1542 }
 0x237   : > { %v2977_v11 = vpop.permute.xlu1 %1562 }
 0x238   : > { %v2975_v0 = vpop.permute.xlu0 %1560 }
 0x23b   : > { %v1547_v37 = vpop.permute.xlu1 %1546 }
 0x23c   : > { %v1545_v51 = vpop.permute.xlu0 %1544 }
 0x23f   : > { %v1551_v27 = vpop.permute.xlu1 %1550 }
 0x240   : > { %v1549_v25 = vpop.permute.xlu0 %1548 }
 0x243   : > { %v1555_v34 = vpop.permute.xlu1 %1554 }
 0x244   : > { %v1553_v2 = vpop.permute.xlu0 %1552 }
 0x290   : > { %v1398_v47 = vpop.f32.mrb[58].mxu1 }
 0x291   : > { %v1402_v61 = vmax.f32 %v1398_v47, 0.0  ;;  %v1892_v63 = vpop.f32.mrb[59].mxu1 }
 0x293   : > { %1896 = vmatmul.mubr.msk.f32.vlgmr.msra.gmra.mrb[60].mxu1 %vm1404_vm4, %v1402_v61 }
 0x366   : > { %v1478_v45 = vpop.f32.mrb[60].mxu1 }
 0x367   : > { %v1483_v50 = vrot.slane %v1478_v45, 1  ;;  %v1897_v44 = vpop.f32.mrb[61].mxu1 }
 0x369   : > { %v1485_v1 = vadd.f32 %v1483_v50, %v1478_v45 }
 0x36b   : > { %v1486_v6 = vsub.f32 0.0, %v1485_v1 }
 0x36d   : > { %v1487_v18 = vmul.f32 1.442695, %v1486_v6 }
 0x36f   : > { %2076 = vpow2.f32 %v1487_v18 }
 0x379   : > { %v2077_v10 = vpop.eup %2076 }
 0x37a   : > { %v1489_v16 = vadd.f32 1.0, %v2077_v10 }
 0x37c   : > { %2078 = vrcp.f32 %v1489_v16 }
 0x386   : > { %v2079_v30 = vpop.eup %2078 }
 0x387   : > { %v1495_v32 = vrot.slane %v2079_v30, %v1494_v26 }
 0x389   : > { %v1496_v55 = vmul.f32 %v1495_v32, %v2806_v22  ;;  %v1497_v35 = vmul.f32 %v1495_v32, %v2804_v19  ;;  %v1498_v41 = vmul.f32 %v1495_v32, %v2808_v23  ;;  %v1499_v49 = vmul.f32 %v1495_v32, %v2814_v28 }
 0x38a   : > { %v1500_v42 = vmul.f32 %v1495_v32, %v2820_v33  ;;  %v1501_v43 = vmul.f32 %v1495_v32, %v2826_v40  ;;  %v1502_v29 = vmul.f32 %v1495_v32, %v2830_v52  ;;  %v1503_v46 = vmul.f32 %v1495_v32, %v2837_v57  ;;  %v1557_v33 = vpop.permute.xlu0 %1556  ;;  %v1559_v40 = vpop.permute.xlu1 %1558 }
 0x38b   : > { %v1504_v22 = vmul.f32 %v1495_v32, %v2841_v62  ;;  %v1505_v19 = vmul.f32 %v1495_v32, %v2848_v4  ;;  %v1506_v23 = vmul.f32 %v1495_v32, %v2852_v9  ;;  %v1507_v28 = vmul.f32 %v1495_v32, %v2859_v15 }
 0x38c   : > { %v1508_v52 = vmul.f32 %v1495_v32, %v2863_v24  ;;  %v1509_v57 = vmul.f32 %v1495_v32, %v2870_v31  ;;  %v1510_v12 = vmul.f32 %v1495_v32, %v2874_v39  ;;  %v1511_v54 = vmul.f32 %v1495_v32, %v2889_v48 }
 0x38d   : > { %v1512_v62 = vmul.f32 %v1495_v32, %v2912_v21  ;;  %v1513_v4 = vmul.f32 %v1495_v32, %v2929_v59  ;;  %v1586_v9 = vsel %vm456_vm0, %v1496_v55, %v1533_v7  ;;  %v1587_v15 = vsel %vm456_vm0, %v1497_v35, %v1535_v3 }
 0x38e   : > { %v1588_v24 = vsel %vm456_vm0, %v1498_v41, %v1537_v13  ;;  %v1589_v31 = vsel %vm456_vm0, %v1499_v49, %v1539_v5  ;;  %v1590_v39 = vsel %vm456_vm0, %v1500_v42, %v1541_v8  ;;  %v1591_v56 = vsel %vm456_vm0, %v1501_v43, %v1543_v38  ;;  %1605 = vst.msk [vmem:[%s2992_s21] sm:$0xff] %vm1604_vm5, %v1586_v9  ;;  %v1565_v53 = vpop.permute.xlu0 %1564  ;;  %v1567_v58 = vpop.permute.xlu1 %1566 }
 0x38f   : > { %1606 = vst.msk [vmem:[%s2992_s21 + $0x8] sm:$0xff] %vm1604_vm5, %v1587_v15  ;;  %v1592_v48 = vsel %vm456_vm0, %v1502_v29, %v1545_v51  ;;  %v1593_v21 = vsel %vm456_vm0, %v1503_v46, %v1547_v37  ;;  %v1594_v59 = vsel %vm456_vm0, %v1504_v22, %v1549_v25  ;;  %v1595_v14 = vsel %vm456_vm0, %v1505_v19, %v1551_v27 }
 0x390   : > { %1607 = vst.msk [vmem:[%s2992_s21 + $0x10] sm:$0xff] %vm1604_vm5, %v1588_v24  ;;  %1608 = vst.msk [vmem:[%s2992_s21 + $0x18] sm:$0xff] %vm1604_vm5, %v1589_v31  ;;  %v1596_v60 = vsel %vm456_vm0, %v1506_v23, %v1553_v2  ;;  %v1597_v36 = vsel %vm456_vm0, %v1507_v28, %v1555_v34  ;;  %v1598_v47 = vsel %vm456_vm0, %v1508_v52, %v1557_v33 }
 0x391   : > { %1609 = vst.msk [vmem:[%s2992_s21 + $0x20] sm:$0xff] %vm1604_vm5, %v1590_v39  ;;  %1610 = vst.msk [vmem:[%s2992_s21 + $0x28] sm:$0xff] %vm1604_vm5, %v1591_v56  ;;  %v1599_v61 = vsel %vm456_vm0, %v1509_v57, %v1559_v40  ;;  %v1600_v63 = vsel %vm456_vm0, %v1510_v12, %v2975_v0  ;;  %v1601_v45 = vsel %vm456_vm0, %v1511_v54, %v2977_v11 }
 0x392   : > { %1611 = vst.msk [vmem:[%s2992_s21 + $0x30] sm:$0xff] %vm1604_vm5, %v1592_v48  ;;  %1612 = vst.msk [vmem:[%s2992_s21 + $0x38] sm:$0xff] %vm1604_vm5, %v1593_v21  ;;  %v1602_v50 = vsel %vm456_vm0, %v1512_v62, %v1565_v53  ;;  %v1603_v44 = vsel %vm456_vm0, %v1513_v4, %v1567_v58 }
 0x393   : > { %1613 = vst.msk [vmem:[%s2992_s21 + $0x40] sm:$0xff] %vm1604_vm5, %v1594_v59  ;;  %1614 = vst.msk [vmem:[%s2992_s21 + $0x48] sm:$0xff] %vm1604_vm5, %v1595_v14 }
 0x394   : > { %1615 = vst.msk [vmem:[%s2992_s21 + $0x50] sm:$0xff] %vm1604_vm5, %v1596_v60  ;;  %1616 = vst.msk [vmem:[%s2992_s21 + $0x58] sm:$0xff] %vm1604_vm5, %v1597_v36 }
 0x395   : > { %1617 = vst.msk [vmem:[%s2992_s21 + $0x60] sm:$0xff] %vm1604_vm5, %v1598_v47  ;;  %1618 = vst.msk [vmem:[%s2992_s21 + $0x68] sm:$0xff] %vm1604_vm5, %v1599_v61 }
 0x396   : > { %1619 = vst.msk [vmem:[%s2992_s21 + $0x70] sm:$0xff] %vm1604_vm5, %v1600_v63  ;;  %1620 = vst.msk [vmem:[%s2992_s21 + $0x78] sm:$0xff] %vm1604_vm5, %v1601_v45 }
 0x397   : > { %1621 = vst.msk [vmem:[%s2992_s21 + $0x80] sm:$0xff] %vm1604_vm5, %v1602_v50  ;;  %1622 = vst.msk [vmem:[%s2992_s21 + $0x88] sm:$0xff] %vm1604_vm5, %v1603_v44 }
 0x398 PF: > { %p19_p11 = scmp.ge.s32.totalorder %s2245_s26, 4   ;;  %s3086_s21 = smov %s2170_s22 }
 0x399   : > { %s3087_s22 = smov %s2174_s23  ;;  %s3088_s23 = smov %s2255_s29 }
 0x39a   : > { %s3089_s24 = smov %s2245_s26  ;;  %21 = sbr.rel (!%p19_p11) target bundleno = 5 (0x5), region = 97 }
 0x3a1   :  { %1644 = vsyncpa [#allocation3], 1 }
 0x3a2   :  { %1646 = vsyncpa [#allocation3 + $0x1], 1 }
 0x3a3   :  { %1647 = vsyncpa [#allocation5], 1 }
 0x3a4   :  { %1649 = vsyncpa [#allocation5 + $0x1], 1 }

</bundles_post_ra>
